<compile_context>
chip_gen: v7x
topology: tpu7x:2x2x1
jax: 0.10.0
libtpu: 0.0.40
codegen_flags: <defaults>
</compile_context>

<pallas_src>
import functools

import jax
import jax.numpy as jnp
from jax.experimental import pallas as pl
from jax.experimental.pallas import tpu as pltpu

_F32 = jnp.float32
_BF16 = jnp.bfloat16

# Tap order t = (oh+1)*3 + (ow+1); t == 4 is the center (identity) tap.
_OFFSETS = [(oh, ow) for oh in (-1, 0, 1) for ow in (-1, 0, 1)]
_CENTER = 4
_VMEM_LIMIT = 32 * 1024 * 1024


# ----------------------------------------------------------------------------
# In-kernel helpers (trace-time Python; everything unrolls)
# ----------------------------------------------------------------------------

def _tap_shifts(W, HW):
    """pltpu.roll amounts so that rolled[p] == v[(p + oh*W + ow) mod HW]."""
    return [(-(oh * W + ow)) % HW for (oh, ow) in _OFFSETS]


def _tap_stack(v, masks_ref, shifts):
    """(Cin, HW) f32 -> (9*Cin, HW) bf16 tap-stacked slab.

    Row t*Cin + c holds channel c shifted for conv tap t, with the out-of-image
    halo zeroed by the precomputed edge mask, so a whole 3x3 same-padding conv
    becomes a single (Cout, 9*Cin) @ (9*Cin, HW) MXU matmul."""
    parts = []
    for t, s in enumerate(shifts):
        if t == _CENTER:
            parts.append(v)                                    # shift 0, mask all-ones
        else:
            parts.append(pltpu.roll(v, s, axis=1) * masks_ref[t])
    return jnp.concatenate(parts, axis=0).astype(_BF16)


# ----------------------------------------------------------------------------
# Kernels
# ----------------------------------------------------------------------------

def _input_conv_kernel(x_ref, w_ref, b_ref, masks_ref, o_ref, *, H, W):
    """Folded Conv3x3+BN+ReLU.  x:(1,Cin,HW)  w:(Cout,9*Cin) bf16  b:(Cout,1) f32."""
    shifts = _tap_shifts(W, H * W)
    x = x_ref[0].astype(_F32)
    stack = _tap_stack(x, masks_ref, shifts)
    y = jnp.dot(w_ref[...], stack, preferred_element_type=_F32) + b_ref[...]
    o_ref[0] = jnp.maximum(y, 0.0).astype(o_ref.dtype)


def _scconv_stack_kernel(x_ref,
                         stem_w_ref, stem_b_ref,
                         k1_w_ref, k1_b_ref, k2_w_ref, k2_b_ref,
                         k3_w_ref, k3_b_ref, k4_w_ref, k4_b_ref,
                         fus_w_ref, fus_b_ref,
                         pool_ref, shift_ref, up_ref, masks_ref,
                         o_ref, act_ref, *, H, W, num_layers):
    """One grid step = one SCConv layer on one image, fully in VMEM.

    grid = (N, num_layers): the activation is carried across the layer axis in
    the `act_ref` VMEM scratch; HBM sees one read of x and one write of the
    final activation per image (output block index depends only on n)."""
    C, HW = x_ref.shape[1], x_ref.shape[2]
    half = C // 2
    shifts = _tap_shifts(W, HW)
    layer = pl.program_id(1)

    @pl.when(layer == 0)
    def _():
        act_ref[...] = x_ref[0].astype(_F32)

    x = act_ref[...]                                             # (C, HW) f32

    # Merged 1x1 stems (rows [0,half)=stem_a, [half,C)=stem_b) + ReLU.
    ab = jnp.dot(stem_w_ref[0], x.astype(_BF16),
                 preferred_element_type=_F32) + stem_b_ref[0]
    ab = jnp.maximum(ab, 0.0)
    a, b = ab[:half], ab[half:]

    # Branch a: a_out = relu(k1(a)) -- one tap-stacked matmul.
    a_out = jnp.maximum(
        jnp.dot(k1_w_ref[0], _tap_stack(a, masks_ref, shifts),
                preferred_element_type=_F32) + k1_b_ref[0], 0.0)

    # Branch b, coarse path: pool ONCE, 9 taps on the pooled grid via tiny
    # (HWp,HWp) shift matrices, k2 as one tap-stacked matmul, nearest upsample
    # as a matmul, sigmoid gate.
    pooled = jnp.dot(b.astype(_BF16), pool_ref[...],
                     preferred_element_type=_F32)                # (half, HWp)
    pooled_b16 = pooled.astype(_BF16)
    p_parts = []
    for t in range(len(_OFFSETS)):
        if t == _CENTER:
            p_parts.append(pooled)
        else:
            p_parts.append(jnp.dot(pooled_b16, shift_ref[t],
                                   preferred_element_type=_F32))
    p_stack = jnp.concatenate(p_parts, axis=0).astype(_BF16)     # (9*half, HWp)
    k2b = jnp.dot(k2_w_ref[0], p_stack,
                  preferred_element_type=_F32) + k2_b_ref[0]     # (half, HWp)
    up = jnp.dot(k2b.astype(_BF16), up_ref[...],
                 preferred_element_type=_F32)                    # (half, HW)
    gate = jax.nn.sigmoid(up + b)

    k3b = jnp.dot(k3_w_ref[0], _tap_stack(b, masks_ref, shifts),
                  preferred_element_type=_F32) + k3_b_ref[0]
    b_gated = k3b * gate
    b_out = jnp.maximum(
        jnp.dot(k4_w_ref[0], _tap_stack(b_gated, masks_ref, shifts),
                preferred_element_type=_F32) + k4_b_ref[0], 0.0)

    # Fusion conv over concat([a_out, b_out]) as ONE tap-stacked matmul,
    # then residual add + ReLU (fused epilogue).
    ab_out = jnp.concatenate([a_out, b_out], axis=0)             # (C, HW)
    fused = jnp.dot(fus_w_ref[0], _tap_stack(ab_out, masks_ref, shifts),
                    preferred_element_type=_F32) + fus_b_ref[0]
    out = jnp.maximum(fused + x, 0.0)

    act_ref[...] = out                                           # carry to next layer

    @pl.when(layer == num_layers - 1)
    def _():
        o_ref[0] = out.astype(o_ref.dtype)


# ----------------------------------------------------------------------------
# pallas_call wrappers
# ----------------------------------------------------------------------------

_LAYER_WEIGHT_NAMES = ("stem_w", "stem_b", "k1_w", "k1_b", "k2_w", "k2_b",
                       "k3_w", "k3_b", "k4_w", "k4_b", "fus_w", "fus_b")


def input_conv(x, p, masks, *, H, W):
    N, Cin, HW = x.shape
    Cout = p["w"].shape[0]
    kern = functools.partial(_input_conv_kernel, H=H, W=W)
    return pl.pallas_call(
        kern,
        out_shape=jax.ShapeDtypeStruct((N, Cout, HW), x.dtype),
        grid=(N,),
        in_specs=[pl.BlockSpec((1, Cin, HW), lambda n: (n, 0, 0)),
                  pl.BlockSpec(p["w"].shape, lambda n: (0, 0)),
                  pl.BlockSpec(p["b"].shape, lambda n: (0, 0)),
                  pl.BlockSpec(masks.shape, lambda n: (0, 0, 0))],
        out_specs=pl.BlockSpec((1, Cout, HW), lambda n: (n, 0, 0)),
        compiler_params=pltpu.CompilerParams(
            dimension_semantics=("parallel",),
            vmem_limit_bytes=_VMEM_LIMIT),
    )(x, p["w"], p["b"], masks)


def scconv_stack(x, layer_params, consts, *, H, W):
    """All SCConv layers in ONE pallas_call: grid (N, L) = (parallel, arbitrary)."""
    N, C, HW = x.shape
    L = layer_params["stem_w"].shape[0]
    pool, shift_mats, up, masks = consts
    weights = [layer_params[name] for name in _LAYER_WEIGHT_NAMES]
    kern = functools.partial(_scconv_stack_kernel, H=H, W=W, num_layers=L)
    layer_specs = [pl.BlockSpec((1,) + w.shape[1:], lambda n, l: (l, 0, 0))
                   for w in weights]
    const_specs = [pl.BlockSpec(c.shape, lambda n, l, _nd=c.ndim: (0,) * _nd)
                   for c in (pool, shift_mats, up, masks)]
    return pl.pallas_call(
        kern,
        out_shape=jax.ShapeDtypeStruct((N, C, HW), x.dtype),
        grid=(N, L),
        in_specs=[pl.BlockSpec((1, C, HW), lambda n, l: (n, 0, 0))]
                 + layer_specs + const_specs,
        out_specs=pl.BlockSpec((1, C, HW), lambda n, l: (n, 0, 0)),
        scratch_shapes=[pltpu.VMEM((C, HW), _F32)],
        compiler_params=pltpu.CompilerParams(
            dimension_semantics=("parallel", "arbitrary"),
            vmem_limit_bytes=_VMEM_LIMIT),
    )(x, *weights, pool, shift_mats, up, masks)


# ----------------------------------------------------------------------------
# Precomputed constants (edge masks, pool / pooled-shift / upsample matrices)
# ----------------------------------------------------------------------------

def make_edge_masks(H, W):
    """(9,1,HW) f32: mask[t,0,p]==1 iff conv tap t's read for output p stays
    inside the image (also gates reads that would wrap after pltpu.roll)."""
    HW = H * W
    pos = jnp.arange(HW)
    hh, ww = pos // W, pos % W
    rows = []
    for oh, ow in _OFFSETS:
        valid = jnp.ones((HW,), jnp.bool_)
        if oh > 0:
            valid = valid & (hh < H - oh)
        elif oh < 0:
            valid = valid & (hh >= -oh)
        if ow > 0:
            valid = valid & (ww < W - ow)
        elif ow < 0:
            valid = valid & (ww >= -ow)
        rows.append(valid)
    return jnp.stack(rows, axis=0).astype(_F32).reshape(len(_OFFSETS), 1, HW)


def make_pool_consts(H, W, r):
    """pool (HW,HWp): AvgPool(r) as a matmul.  shift (9,HWp,HWp): zero-padded
    3x3 taps on the pooled grid.  up (HWp,HW): nearest-neighbor upsample.
    Entries are 0 / 1 / 1/r^2 -> lossless in bf16."""
    Ho, Wo = H // r, W // r
    HW, HWp = H * W, Ho * Wo
    win = ((jnp.arange(H)[:, None] // r) * Wo
           + (jnp.arange(W)[None, :] // r)).reshape(HW)        # window id per pixel
    pool = (win[:, None] == jnp.arange(HWp)[None, :]).astype(_F32) / (r * r)
    up = (jnp.arange(HWp)[:, None] == win[None, :]).astype(_F32)
    ph, pw = jnp.arange(HWp) // Wo, jnp.arange(HWp) % Wo
    shifts = []
    for oh, ow in _OFFSETS:
        sh, sw = ph + oh, pw + ow
        valid = (sh >= 0) & (sh < Ho) & (sw >= 0) & (sw < Wo)
        src = sh * Wo + sw
        shifts.append(((jnp.arange(HWp)[:, None] == src[None, :])
                       & valid[None, :]).astype(_F32))          # (HWp, HWp)
    shift_mats = jnp.stack(shifts, axis=0)                       # (9, HWp, HWp)
    return pool.astype(_BF16), shift_mats.astype(_BF16), up.astype(_BF16)


# ----------------------------------------------------------------------------
# Forward
# ----------------------------------------------------------------------------

def scblock_forward(x_nchw, params, pooling_r=4):
    """SCBlock.forward; NCHW in/out (internally (N,C,H*W) -- pure reshape of NCHW)."""
    N, Cin, H, W = x_nchw.shape
    HW = H * W
    assert H % pooling_r == 0 and W % pooling_r == 0
    assert HW % 128 == 0, "H*W must be a multiple of 128 for lane-dense tiles"
    C = params["input_block"]["w"].shape[0]
    assert C % 16 == 0, "need 8-sublane-aligned half-channel slabs (C % 16 == 0)"
    x = x_nchw.reshape(N, Cin, HW)
    masks = make_edge_masks(H, W)
    out = input_conv(x, params["input_block"], masks, H=H, W=W)
    pool, shift_mats, up = make_pool_consts(H, W, pooling_r)
    out = scconv_stack(out, params["sc_layers"], (pool, shift_mats, up, masks),
                       H=H, W=W)
    return out.reshape(N, C, H, W)


# ----------------------------------------------------------------------------
# Deterministic parameter construction (Conv+BN folded, BN in eval mode)
# ----------------------------------------------------------------------------

def make_conv_bn_params(key, cin, cout, K, conv_bias=False, eps=1e-3):
    """Folded Conv(KxK)+BN -> w:(K*K, Cout, Cin) tap-major f32, b:(Cout, 1) f32."""
    ks = jax.random.split(key, 6)
    w = jax.random.normal(ks[0], (K * K, cout, cin), _F32)
    w = w * (1.0 / (K * K * cin) ** 0.5)
    gamma = 1.0 + 0.1 * jax.random.normal(ks[1], (cout,), _F32)
    beta = 0.05 * jax.random.normal(ks[2], (cout,), _F32)
    mean = 0.02 * jax.random.normal(ks[3], (cout,), _F32)
    var = 0.5 + jax.random.uniform(ks[4], (cout,), _F32)
    cb = (0.02 * jax.random.normal(ks[5], (cout,), _F32)
          if conv_bias else jnp.zeros((cout,), _F32))
    scale = gamma / jnp.sqrt(var + eps)
    return {"w": w * scale[None, :, None],
            "b": ((cb - mean) * scale + beta).reshape(cout, 1)}


def _stack_taps_w(w):
    """(K*K, Cout, Cin) -> (Cout, K*K*Cin) bf16, matching _tap_stack's row order
    (row t*Cin + c <-> tap t, input channel c)."""
    kk, cout, cin = w.shape
    return jnp.transpose(w, (1, 0, 2)).reshape(cout, kk * cin).astype(_BF16)


def make_scblock_params(key, in_ch, out_ch, layer_num):
    keys = jax.random.split(key, 1 + layer_num)
    ib = make_conv_bn_params(keys[0], in_ch, out_ch, 3, conv_bias=True)
    params = {"input_block": {"w": _stack_taps_w(ib["w"]), "b": ib["b"]}}
    half = out_ch // 2
    per_layer = []
    for i in range(layer_num):
        k = jax.random.split(keys[1 + i], 7)
        sa = make_conv_bn_params(k[0], out_ch, half, 1)
        sb = make_conv_bn_params(k[1], out_ch, half, 1)
        k1 = make_conv_bn_params(k[2], half, half, 3)
        k2 = make_conv_bn_params(k[3], half, half, 3)
        k3 = make_conv_bn_params(k[4], half, half, 3)
        k4 = make_conv_bn_params(k[5], half, half, 3)
        fu = make_conv_bn_params(k[6], out_ch, out_ch, 3)
        per_layer.append({
            # stems merged into one 1x1 conv: rows [0,half)=stem_a, [half,C)=stem_b
            "stem_w": jnp.concatenate([sa["w"][0], sb["w"][0]],
                                      axis=0).astype(_BF16),         # (C, C)
            "stem_b": jnp.concatenate([sa["b"], sb["b"]], axis=0),   # (C, 1)
            "k1_w": _stack_taps_w(k1["w"]), "k1_b": k1["b"],
            "k2_w": _stack_taps_w(k2["w"]), "k2_b": k2["b"],
            "k3_w": _stack_taps_w(k3["w"]), "k3_b": k3["b"],
            "k4_w": _stack_taps_w(k4["w"]), "k4_b": k4["b"],
            # fusion weight's Cin order already matches concat([a_out, b_out])
            "fus_w": _stack_taps_w(fu["w"]), "fus_b": fu["b"],
        })
    # Stack per-layer weights with a leading layer axis (indexed by the layer grid axis).
    params["sc_layers"] = {name: jnp.stack([lyr[name] for lyr in per_layer], axis=0)
                           for name in per_layer[0]}
    return params


# ----------------------------------------------------------------------------

if __name__ == "__main__":
    # half = out_ch//2 = 8 keeps channel slabs 8-sublane aligned,
    # H*W = 256 lanes (multiple of 128 -> fully lane-dense stores).
    N, C_IN, C_OUT, H, W = 2, 8, 16, 16, 16
    key = jax.random.PRNGKey(0)
    kx, kp = jax.random.split(key)
    x = jax.random.normal(kx, (N, C_IN, H, W), jnp.float32)   # NCHW like PyTorch
    params = make_scblock_params(kp, in_ch=C_IN, out_ch=C_OUT, layer_num=2)

    fwd = jax.jit(functools.partial(scblock_forward, pooling_r=4))
    out = jax.block_until_ready(fwd(x, params))
    assert out.shape == (N, C_OUT, H, W)
    assert bool(jnp.all(jnp.isfinite(out)))
    print("KERNEL_OK")
</pallas_src>

<mosaic_0001>
module attributes {stable_mosaic.version = 11 : i64} {
  func.func @_input_conv_kernel(%arg0: i32, %arg1: memref<1x8x256xf32, #tpu.memory_space<vmem>>, %arg2: memref<16x72xbf16, #tpu.memory_space<vmem>>, %arg3: memref<16x1xf32, #tpu.memory_space<vmem>>, %arg4: memref<9x1x256xf32, #tpu.memory_space<vmem>>, %arg5: memref<1x16x256xf32, #tpu.memory_space<vmem>>) attributes {dimension_semantics = [#tpu.dimension_semantics<parallel>], iteration_bounds = array<i64: 2>, scalar_prefetch = 0 : i64, scratch_operands = 0 : i64, tpu.core_type = #tpu.core_type<tc>, window_params = [{transform_indices = @transform_0, window_bounds = array<i64: 1, 8, 256>}, {pipeline_mode = #tpu.pipeline_mode<synchronous>, transform_indices = @transform_1, window_bounds = array<i64: 16, 72>}, {pipeline_mode = #tpu.pipeline_mode<synchronous>, transform_indices = @transform_2, window_bounds = array<i64: 16, 1>}, {pipeline_mode = #tpu.pipeline_mode<synchronous>, transform_indices = @transform_3, window_bounds = array<i64: 9, 1, 256>}, {transform_indices = @transform_4, window_bounds = array<i64: 1, 16, 256>}]} {
    %c0 = arith.constant 0 : index
    %c0_0 = arith.constant 0 : index
    %c0_1 = arith.constant 0 : index
    %0 = vector.load %arg1[%c0, %c0_0, %c0_1] : memref<1x8x256xf32, #tpu.memory_space<vmem>>, vector<1x8x256xf32>
    %1 = vector.shape_cast %0 : vector<1x8x256xf32> to vector<8x256xf32>
    %c17_i32 = arith.constant 17 : i32
    %2 = tpu.dynamic_rotate %1 by %c17_i32 dim 1 : vector<8x256xf32>, i32 -> vector<8x256xf32>
    %c0_2 = arith.constant 0 : index
    %c0_3 = arith.constant 0 : index
    %c0_4 = arith.constant 0 : index
    %3 = vector.load %arg4[%c0_2, %c0_3, %c0_4] : memref<9x1x256xf32, #tpu.memory_space<vmem>>, vector<1x1x256xf32>
    %4 = vector.shape_cast %3 : vector<1x1x256xf32> to vector<1x256xf32>
    %5 = vector.broadcast %4 : vector<1x256xf32> to vector<8x256xf32>
    %6 = arith.mulf %2, %5 : vector<8x256xf32>
    %c16_i32 = arith.constant 16 : i32
    %7 = tpu.dynamic_rotate %1 by %c16_i32 dim 1 : vector<8x256xf32>, i32 -> vector<8x256xf32>
    %c1 = arith.constant 1 : index
    %c0_5 = arith.constant 0 : index
    %c0_6 = arith.constant 0 : index
    %8 = vector.load %arg4[%c1, %c0_5, %c0_6] : memref<9x1x256xf32, #tpu.memory_space<vmem>>, vector<1x1x256xf32>
    %9 = vector.shape_cast %8 : vector<1x1x256xf32> to vector<1x256xf32>
    %10 = vector.broadcast %9 : vector<1x256xf32> to vector<8x256xf32>
    %11 = arith.mulf %7, %10 : vector<8x256xf32>
    %c15_i32 = arith.constant 15 : i32
    %12 = tpu.dynamic_rotate %1 by %c15_i32 dim 1 : vector<8x256xf32>, i32 -> vector<8x256xf32>
    %c2 = arith.constant 2 : index
    %c0_7 = arith.constant 0 : index
    %c0_8 = arith.constant 0 : index
    %13 = vector.load %arg4[%c2, %c0_7, %c0_8] : memref<9x1x256xf32, #tpu.memory_space<vmem>>, vector<1x1x256xf32>
    %14 = vector.shape_cast %13 : vector<1x1x256xf32> to vector<1x256xf32>
    %15 = vector.broadcast %14 : vector<1x256xf32> to vector<8x256xf32>
    %16 = arith.mulf %12, %15 : vector<8x256xf32>
    %c1_i32 = arith.constant 1 : i32
    %17 = tpu.dynamic_rotate %1 by %c1_i32 dim 1 : vector<8x256xf32>, i32 -> vector<8x256xf32>
    %c3 = arith.constant 3 : index
    %c0_9 = arith.constant 0 : index
    %c0_10 = arith.constant 0 : index
    %18 = vector.load %arg4[%c3, %c0_9, %c0_10] : memref<9x1x256xf32, #tpu.memory_space<vmem>>, vector<1x1x256xf32>
    %19 = vector.shape_cast %18 : vector<1x1x256xf32> to vector<1x256xf32>
    %20 = vector.broadcast %19 : vector<1x256xf32> to vector<8x256xf32>
    %21 = arith.mulf %17, %20 : vector<8x256xf32>
    %c255_i32 = arith.constant 255 : i32
    %22 = tpu.dynamic_rotate %1 by %c255_i32 dim 1 : vector<8x256xf32>, i32 -> vector<8x256xf32>
    %c5 = arith.constant 5 : index
    %c0_11 = arith.constant 0 : index
    %c0_12 = arith.constant 0 : index
    %23 = vector.load %arg4[%c5, %c0_11, %c0_12] : memref<9x1x256xf32, #tpu.memory_space<vmem>>, vector<1x1x256xf32>
    %24 = vector.shape_cast %23 : vector<1x1x256xf32> to vector<1x256xf32>
    %25 = vector.broadcast %24 : vector<1x256xf32> to vector<8x256xf32>
    %26 = arith.mulf %22, %25 : vector<8x256xf32>
    %c241_i32 = arith.constant 241 : i32
    %27 = tpu.dynamic_rotate %1 by %c241_i32 dim 1 : vector<8x256xf32>, i32 -> vector<8x256xf32>
    %c6 = arith.constant 6 : index
    %c0_13 = arith.constant 0 : index
    %c0_14 = arith.constant 0 : index
    %28 = vector.load %arg4[%c6, %c0_13, %c0_14] : memref<9x1x256xf32, #tpu.memory_space<vmem>>, vector<1x1x256xf32>
    %29 = vector.shape_cast %28 : vector<1x1x256xf32> to vector<1x256xf32>
    %30 = vector.broadcast %29 : vector<1x256xf32> to vector<8x256xf32>
    %31 = arith.mulf %27, %30 : vector<8x256xf32>
    %c240_i32 = arith.constant 240 : i32
    %32 = tpu.dynamic_rotate %1 by %c240_i32 dim 1 : vector<8x256xf32>, i32 -> vector<8x256xf32>
    %c7 = arith.constant 7 : index
    %c0_15 = arith.constant 0 : index
    %c0_16 = arith.constant 0 : index
    %33 = vector.load %arg4[%c7, %c0_15, %c0_16] : memref<9x1x256xf32, #tpu.memory_space<vmem>>, vector<1x1x256xf32>
    %34 = vector.shape_cast %33 : vector<1x1x256xf32> to vector<1x256xf32>
    %35 = vector.broadcast %34 : vector<1x256xf32> to vector<8x256xf32>
    %36 = arith.mulf %32, %35 : vector<8x256xf32>
    %c239_i32 = arith.constant 239 : i32
    %37 = tpu.dynamic_rotate %1 by %c239_i32 dim 1 : vector<8x256xf32>, i32 -> vector<8x256xf32>
    %c8 = arith.constant 8 : index
    %c0_17 = arith.constant 0 : index
    %c0_18 = arith.constant 0 : index
    %38 = vector.load %arg4[%c8, %c0_17, %c0_18] : memref<9x1x256xf32, #tpu.memory_space<vmem>>, vector<1x1x256xf32>
    %39 = vector.shape_cast %38 : vector<1x1x256xf32> to vector<1x256xf32>
    %40 = vector.broadcast %39 : vector<1x256xf32> to vector<8x256xf32>
    %41 = arith.mulf %37, %40 : vector<8x256xf32>
    %42 = tpu.concatenate %6, %11, %16, %21, %1, %26, %31, %36, %41 in 0 : vector<8x256xf32>, vector<8x256xf32>, vector<8x256xf32>, vector<8x256xf32>, vector<8x256xf32>, vector<8x256xf32>, vector<8x256xf32>, vector<8x256xf32>, vector<8x256xf32> -> vector<72x256xf32>
    %43 = arith.truncf %42 : vector<72x256xf32> to vector<72x256xbf16>
    %c0_19 = arith.constant 0 : index
    %c0_20 = arith.constant 0 : index
    %44 = vector.load %arg2[%c0_19, %c0_20] : memref<16x72xbf16, #tpu.memory_space<vmem>>, vector<16x72xbf16>
    %cst = arith.constant dense<0.000000e+00> : vector<16x256xf32>
    %45 = tpu.matmul %44, %43, %cst {dimension_numbers = #tpu.dot_dimension_numbers<[1], [0], [0], [1], [0, 0, 1, 1], [], []>} : vector<16x72xbf16>, vector<72x256xbf16>, vector<16x256xf32> -> vector<16x256xf32>
    %c0_21 = arith.constant 0 : index
    %c0_22 = arith.constant 0 : index
    %46 = vector.load %arg3[%c0_21, %c0_22] : memref<16x1xf32, #tpu.memory_space<vmem>>, vector<16x1xf32>
    %47 = vector.broadcast %46 : vector<16x1xf32> to vector<16x256xf32>
    %48 = arith.addf %45, %47 : vector<16x256xf32>
    %cst_23 = arith.constant 0.000000e+00 : f32
    %49 = vector.broadcast %cst_23 : f32 to vector<16x256xf32>
    %50 = arith.maximumf %48, %49 : vector<16x256xf32>
    %c0_24 = arith.constant 0 : index
    %c0_25 = arith.constant 0 : index
    %c0_26 = arith.constant 0 : index
    %51 = vector.load %arg5[%c0_24, %c0_25, %c0_26] : memref<1x16x256xf32, #tpu.memory_space<vmem>>, vector<1x16x256xf32>
    %52 = vector.shape_cast %51 : vector<1x16x256xf32> to vector<16x256xf32>
    %53 = vector.shape_cast %50 : vector<16x256xf32> to vector<1x16x256xf32>
    tpu.vector_store %arg5[%c0_24, %c0_25, %c0_26], %53 {strides = array<i32>} : memref<1x16x256xf32, #tpu.memory_space<vmem>>, vector<1x16x256xf32>,
    return
  }
  func.func @transform_0(%arg0: i32) -> (i32, i32, i32) {
    %c0_i32 = arith.constant 0 : i32
    %c0_i32_0 = arith.constant 0 : i32
    %c0_i32_1 = arith.constant 0 : i32
    return %arg0, %c0_i32, %c0_i32_0 : i32, i32, i32
  }
  func.func @transform_1(%arg0: i32) -> (i32, i32) {
    %c0_i32 = arith.constant 0 : i32
    %c0_i32_0 = arith.constant 0 : i32
    %c0_i32_1 = arith.constant 0 : i32
    return %c0_i32, %c0_i32_0 : i32, i32
  }
  func.func @transform_2(%arg0: i32) -> (i32, i32) {
    %c0_i32 = arith.constant 0 : i32
    %c0_i32_0 = arith.constant 0 : i32
    %c0_i32_1 = arith.constant 0 : i32
    return %c0_i32, %c0_i32_0 : i32, i32
  }
  func.func @transform_3(%arg0: i32) -> (i32, i32, i32) {
    %c0_i32 = arith.constant 0 : i32
    %c0_i32_0 = arith.constant 0 : i32
    %c0_i32_1 = arith.constant 0 : i32
    %c0_i32_2 = arith.constant 0 : i32
    return %c0_i32, %c0_i32_0, %c0_i32_1 : i32, i32, i32
  }
  func.func @transform_4(%arg0: i32) -> (i32, i32, i32) {
    %c0_i32 = arith.constant 0 : i32
    %c0_i32_0 = arith.constant 0 : i32
    %c0_i32_1 = arith.constant 0 : i32
    return %arg0, %c0_i32, %c0_i32_0 : i32, i32, i32
  }
}

module attributes {stable_mosaic.version = 11 : i64} {
  func.func @_scconv_stack_kernel(%arg0: i32, %arg1: i32, %arg2: memref<1x16x256xf32, #tpu.memory_space<vmem>>, %arg3: memref<1x16x16xbf16, #tpu.memory_space<vmem>>, %arg4: memref<1x16x1xf32, #tpu.memory_space<vmem>>, %arg5: memref<1x8x72xbf16, #tpu.memory_space<vmem>>, %arg6: memref<1x8x1xf32, #tpu.memory_space<vmem>>, %arg7: memref<1x8x72xbf16, #tpu.memory_space<vmem>>, %arg8: memref<1x8x1xf32, #tpu.memory_space<vmem>>, %arg9: memref<1x8x72xbf16, #tpu.memory_space<vmem>>, %arg10: memref<1x8x1xf32, #tpu.memory_space<vmem>>, %arg11: memref<1x8x72xbf16, #tpu.memory_space<vmem>>, %arg12: memref<1x8x1xf32, #tpu.memory_space<vmem>>, %arg13: memref<1x16x144xbf16, #tpu.memory_space<vmem>>, %arg14: memref<1x16x1xf32, #tpu.memory_space<vmem>>, %arg15: memref<256x16xbf16, #tpu.memory_space<vmem>>, %arg16: memref<9x16x16xbf16, #tpu.memory_space<vmem>>, %arg17: memref<16x256xbf16, #tpu.memory_space<vmem>>, %arg18: memref<9x1x256xf32, #tpu.memory_space<vmem>>, %arg19: memref<1x16x256xf32, #tpu.memory_space<vmem>>, %arg20: memref<16x256xf32, #tpu.memory_space<vmem>>) attributes {dimension_semantics = [#tpu.dimension_semantics<parallel>, #tpu.dimension_semantics<arbitrary>], iteration_bounds = array<i64: 2, 2>, scalar_prefetch = 0 : i64, scratch_operands = 1 : i64, tpu.core_type = #tpu.core_type<tc>, window_params = [{transform_indices = @transform_0, window_bounds = array<i64: 1, 16, 256>}, {transform_indices = @transform_1, window_bounds = array<i64: 1, 16, 16>}, {transform_indices = @transform_2, window_bounds = array<i64: 1, 16, 1>}, {transform_indices = @transform_3, window_bounds = array<i64: 1, 8, 72>}, {transform_indices = @transform_4, window_bounds = array<i64: 1, 8, 1>}, {transform_indices = @transform_5, window_bounds = array<i64: 1, 8, 72>}, {transform_indices = @transform_6, window_bounds = array<i64: 1, 8, 1>}, {transform_indices = @transform_7, window_bounds = array<i64: 1, 8, 72>}, {transform_indices = @transform_8, window_bounds = array<i64: 1, 8, 1>}, {transform_indices = @transform_9, window_bounds = array<i64: 1, 8, 72>}, {transform_indices = @transform_10, window_bounds = array<i64: 1, 8, 1>}, {transform_indices = @transform_11, window_bounds = array<i64: 1, 16, 144>}, {transform_indices = @transform_12, window_bounds = array<i64: 1, 16, 1>}, {pipeline_mode = #tpu.pipeline_mode<synchronous>, transform_indices = @transform_13, window_bounds = array<i64: 256, 16>}, {pipeline_mode = #tpu.pipeline_mode<synchronous>, transform_indices = @transform_14, window_bounds = array<i64: 9, 16, 16>}, {pipeline_mode = #tpu.pipeline_mode<synchronous>, transform_indices = @transform_15, window_bounds = array<i64: 16, 256>}, {pipeline_mode = #tpu.pipeline_mode<synchronous>, transform_indices = @transform_16, window_bounds = array<i64: 9, 1, 256>}, {transform_indices = @transform_17, window_bounds = array<i64: 1, 16, 256>}]} {
    %c0_i32 = arith.constant 0 : i32
    %0 = arith.cmpi eq, %arg1, %c0_i32 : i32
    %1 = arith.extui %0 : i1 to i32
    %c0_i32_0 = arith.constant 0 : i32
    %2 = arith.cmpi ne, %1, %c0_i32_0 : i32
    scf.if %2 {
      %c0_203 = arith.constant 0 : index
      %c0_204 = arith.constant 0 : index
      %c0_205 = arith.constant 0 : index
      %271 = vector.load %arg2[%c0_203, %c0_204, %c0_205] : memref<1x16x256xf32, #tpu.memory_space<vmem>>, vector<1x16x256xf32>
      %272 = vector.shape_cast %271 : vector<1x16x256xf32> to vector<16x256xf32>
      %c0_206 = arith.constant 0 : index
      %c0_207 = arith.constant 0 : index
      %273 = vector.load %arg20[%c0_206, %c0_207] : memref<16x256xf32, #tpu.memory_space<vmem>>, vector<16x256xf32>
      tpu.vector_store %arg20[%c0_206, %c0_207], %272 {strides = array<i32>} : memref<16x256xf32, #tpu.memory_space<vmem>>, vector<16x256xf32>,
    } else {
    }
    %c0 = arith.constant 0 : index
    %c0_1 = arith.constant 0 : index
    %3 = vector.load %arg20[%c0, %c0_1] : memref<16x256xf32, #tpu.memory_space<vmem>>, vector<16x256xf32>
    %c0_2 = arith.constant 0 : index
    %c0_3 = arith.constant 0 : index
    %c0_4 = arith.constant 0 : index
    %4 = vector.load %arg3[%c0_2, %c0_3, %c0_4] : memref<1x16x16xbf16, #tpu.memory_space<vmem>>, vector<1x16x16xbf16>
    %5 = vector.shape_cast %4 : vector<1x16x16xbf16> to vector<16x16xbf16>
    %6 = arith.truncf %3 : vector<16x256xf32> to vector<16x256xbf16>
    %cst = arith.constant dense<0.000000e+00> : vector<16x256xf32>
    %7 = tpu.matmul %5, %6, %cst {dimension_numbers = #tpu.dot_dimension_numbers<[1], [0], [0], [1], [0, 0, 1, 1], [], []>} : vector<16x16xbf16>, vector<16x256xbf16>, vector<16x256xf32> -> vector<16x256xf32>
    %c0_5 = arith.constant 0 : index
    %c0_6 = arith.constant 0 : index
    %c0_7 = arith.constant 0 : index
    %8 = vector.load %arg4[%c0_5, %c0_6, %c0_7] : memref<1x16x1xf32, #tpu.memory_space<vmem>>, vector<1x16x1xf32>
    %9 = vector.shape_cast %8 : vector<1x16x1xf32> to vector<16x1xf32>
    %10 = vector.broadcast %9 : vector<16x1xf32> to vector<16x256xf32>
    %11 = arith.addf %7, %10 : vector<16x256xf32>
    %cst_8 = arith.constant 0.000000e+00 : f32
    %12 = vector.broadcast %cst_8 : f32 to vector<16x256xf32>
    %13 = arith.maximumf %11, %12 : vector<16x256xf32>
    %14 = vector.extract_strided_slice %13 {offsets = [0, 0], sizes = [8, 256], strides = [1, 1]} : vector<16x256xf32> to vector<8x256xf32>
    %15 = vector.extract_strided_slice %13 {offsets = [8, 0], sizes = [8, 256], strides = [1, 1]} : vector<16x256xf32> to vector<8x256xf32>
    %c0_9 = arith.constant 0 : index
    %c0_10 = arith.constant 0 : index
    %c0_11 = arith.constant 0 : index
    %16 = vector.load %arg5[%c0_9, %c0_10, %c0_11] : memref<1x8x72xbf16, #tpu.memory_space<vmem>>, vector<1x8x72xbf16>
    %17 = vector.shape_cast %16 : vector<1x8x72xbf16> to vector<8x72xbf16>
    %c17_i32 = arith.constant 17 : i32
    %18 = tpu.dynamic_rotate %14 by %c17_i32 dim 1 : vector<8x256xf32>, i32 -> vector<8x256xf32>
    %c0_12 = arith.constant 0 : index
    %c0_13 = arith.constant 0 : index
    %c0_14 = arith.constant 0 : index
    %19 = vector.load %arg18[%c0_12, %c0_13, %c0_14] : memref<9x1x256xf32, #tpu.memory_space<vmem>>, vector<1x1x256xf32>
    %20 = vector.shape_cast %19 : vector<1x1x256xf32> to vector<1x256xf32>
    %21 = vector.broadcast %20 : vector<1x256xf32> to vector<8x256xf32>
    %22 = arith.mulf %18, %21 : vector<8x256xf32>
    %c16_i32 = arith.constant 16 : i32
    %23 = tpu.dynamic_rotate %14 by %c16_i32 dim 1 : vector<8x256xf32>, i32 -> vector<8x256xf32>
    %c1 = arith.constant 1 : index
    %c0_15 = arith.constant 0 : index
    %c0_16 = arith.constant 0 : index
    %24 = vector.load %arg18[%c1, %c0_15, %c0_16] : memref<9x1x256xf32, #tpu.memory_space<vmem>>, vector<1x1x256xf32>
    %25 = vector.shape_cast %24 : vector<1x1x256xf32> to vector<1x256xf32>
    %26 = vector.broadcast %25 : vector<1x256xf32> to vector<8x256xf32>
    %27 = arith.mulf %23, %26 : vector<8x256xf32>
    %c15_i32 = arith.constant 15 : i32
    %28 = tpu.dynamic_rotate %14 by %c15_i32 dim 1 : vector<8x256xf32>, i32 -> vector<8x256xf32>
    %c2 = arith.constant 2 : index
    %c0_17 = arith.constant 0 : index
    %c0_18 = arith.constant 0 : index
    %29 = vector.load %arg18[%c2, %c0_17, %c0_18] : memref<9x1x256xf32, #tpu.memory_space<vmem>>, vector<1x1x256xf32>
    %30 = vector.shape_cast %29 : vector<1x1x256xf32> to vector<1x256xf32>
    %31 = vector.broadcast %30 : vector<1x256xf32> to vector<8x256xf32>
    %32 = arith.mulf %28, %31 : vector<8x256xf32>
    %c1_i32 = arith.constant 1 : i32
    %33 = tpu.dynamic_rotate %14 by %c1_i32 dim 1 : vector<8x256xf32>, i32 -> vector<8x256xf32>
    %c3 = arith.constant 3 : index
    %c0_19 = arith.constant 0 : index
    %c0_20 = arith.constant 0 : index
    %34 = vector.load %arg18[%c3, %c0_19, %c0_20] : memref<9x1x256xf32, #tpu.memory_space<vmem>>, vector<1x1x256xf32>
    %35 = vector.shape_cast %34 : vector<1x1x256xf32> to vector<1x256xf32>
    %36 = vector.broadcast %35 : vector<1x256xf32> to vector<8x256xf32>
    %37 = arith.mulf %33, %36 : vector<8x256xf32>
    %c255_i32 = arith.constant 255 : i32
    %38 = tpu.dynamic_rotate %14 by %c255_i32 dim 1 : vector<8x256xf32>, i32 -> vector<8x256xf32>
    %c5 = arith.constant 5 : index
    %c0_21 = arith.constant 0 : index
    %c0_22 = arith.constant 0 : index
    %39 = vector.load %arg18[%c5, %c0_21, %c0_22] : memref<9x1x256xf32, #tpu.memory_space<vmem>>, vector<1x1x256xf32>
    %40 = vector.shape_cast %39 : vector<1x1x256xf32> to vector<1x256xf32>
    %41 = vector.broadcast %40 : vector<1x256xf32> to vector<8x256xf32>
    %42 = arith.mulf %38, %41 : vector<8x256xf32>
    %c241_i32 = arith.constant 241 : i32
    %43 = tpu.dynamic_rotate %14 by %c241_i32 dim 1 : vector<8x256xf32>, i32 -> vector<8x256xf32>
    %c6 = arith.constant 6 : index
    %c0_23 = arith.constant 0 : index
    %c0_24 = arith.constant 0 : index
    %44 = vector.load %arg18[%c6, %c0_23, %c0_24] : memref<9x1x256xf32, #tpu.memory_space<vmem>>, vector<1x1x256xf32>
    %45 = vector.shape_cast %44 : vector<1x1x256xf32> to vector<1x256xf32>
    %46 = vector.broadcast %45 : vector<1x256xf32> to vector<8x256xf32>
    %47 = arith.mulf %43, %46 : vector<8x256xf32>
    %c240_i32 = arith.constant 240 : i32
    %48 = tpu.dynamic_rotate %14 by %c240_i32 dim 1 : vector<8x256xf32>, i32 -> vector<8x256xf32>
    %c7 = arith.constant 7 : index
    %c0_25 = arith.constant 0 : index
    %c0_26 = arith.constant 0 : index
    %49 = vector.load %arg18[%c7, %c0_25, %c0_26] : memref<9x1x256xf32, #tpu.memory_space<vmem>>, vector<1x1x256xf32>
    %50 = vector.shape_cast %49 : vector<1x1x256xf32> to vector<1x256xf32>
    %51 = vector.broadcast %50 : vector<1x256xf32> to vector<8x256xf32>
    %52 = arith.mulf %48, %51 : vector<8x256xf32>
    %c239_i32 = arith.constant 239 : i32
    %53 = tpu.dynamic_rotate %14 by %c239_i32 dim 1 : vector<8x256xf32>, i32 -> vector<8x256xf32>
    %c8 = arith.constant 8 : index
    %c0_27 = arith.constant 0 : index
    %c0_28 = arith.constant 0 : index
    %54 = vector.load %arg18[%c8, %c0_27, %c0_28] : memref<9x1x256xf32, #tpu.memory_space<vmem>>, vector<1x1x256xf32>
    %55 = vector.shape_cast %54 : vector<1x1x256xf32> to vector<1x256xf32>
    %56 = vector.broadcast %55 : vector<1x256xf32> to vector<8x256xf32>
    %57 = arith.mulf %53, %56 : vector<8x256xf32>
    %58 = tpu.concatenate %22, %27, %32, %37, %14, %42, %47, %52, %57 in 0 : vector<8x256xf32>, vector<8x256xf32>, vector<8x256xf32>, vector<8x256xf32>, vector<8x256xf32>, vector<8x256xf32>, vector<8x256xf32>, vector<8x256xf32>, vector<8x256xf32> -> vector<72x256xf32>
    %59 = arith.truncf %58 : vector<72x256xf32> to vector<72x256xbf16>
    %cst_29 = arith.constant dense<0.000000e+00> : vector<8x256xf32>
    %60 = tpu.matmul %17, %59, %cst_29 {dimension_numbers = #tpu.dot_dimension_numbers<[1], [0], [0], [1], [0, 0, 1, 1], [], []>} : vector<8x72xbf16>, vector<72x256xbf16>, vector<8x256xf32> -> vector<8x256xf32>
    %c0_30 = arith.constant 0 : index
    %c0_31 = arith.constant 0 : index
    %c0_32 = arith.constant 0 : index
    %61 = vector.load %arg6[%c0_30, %c0_31, %c0_32] : memref<1x8x1xf32, #tpu.memory_space<vmem>>, vector<1x8x1xf32>
    %62 = vector.shape_cast %61 : vector<1x8x1xf32> to vector<8x1xf32>
    %63 = vector.broadcast %62 : vector<8x1xf32> to vector<8x256xf32>
    %64 = arith.addf %60, %63 : vector<8x256xf32>
    %cst_33 = arith.constant 0.000000e+00 : f32
    %65 = vector.broadcast %cst_33 : f32 to vector<8x256xf32>
    %66 = arith.maximumf %64, %65 : vector<8x256xf32>
    %67 = arith.truncf %15 : vector<8x256xf32> to vector<8x256xbf16>
    %c0_34 = arith.constant 0 : index
    %c0_35 = arith.constant 0 : index
    %68 = vector.load %arg15[%c0_34, %c0_35] : memref<256x16xbf16, #tpu.memory_space<vmem>>, vector<256x16xbf16>
    %cst_36 = arith.constant dense<0.000000e+00> : vector<8x16xf32>
    %69 = tpu.matmul %67, %68, %cst_36 {dimension_numbers = #tpu.dot_dimension_numbers<[1], [0], [0], [1], [0, 0, 1, 1], [], []>} : vector<8x256xbf16>, vector<256x16xbf16>, vector<8x16xf32> -> vector<8x16xf32>
    %70 = arith.truncf %69 : vector<8x16xf32> to vector<8x16xbf16>
    %c0_37 = arith.constant 0 : index
    %c0_38 = arith.constant 0 : index
    %c0_39 = arith.constant 0 : index
    %71 = vector.load %arg16[%c0_37, %c0_38, %c0_39] : memref<9x16x16xbf16, #tpu.memory_space<vmem>>, vector<1x16x16xbf16>
    %72 = vector.shape_cast %71 : vector<1x16x16xbf16> to vector<16x16xbf16>
    %cst_40 = arith.constant dense<0.000000e+00> : vector<8x16xf32>
    %73 = tpu.matmul %70, %72, %cst_40 {dimension_numbers = #tpu.dot_dimension_numbers<[1], [0], [0], [1], [0, 0, 1, 1], [], []>} : vector<8x16xbf16>, vector<16x16xbf16>, vector<8x16xf32> -> vector<8x16xf32>
    %c1_41 = arith.constant 1 : index
    %c0_42 = arith.constant 0 : index
    %c0_43 = arith.constant 0 : index
    %74 = vector.load %arg16[%c1_41, %c0_42, %c0_43] : memref<9x16x16xbf16, #tpu.memory_space<vmem>>, vector<1x16x16xbf16>
    %75 = vector.shape_cast %74 : vector<1x16x16xbf16> to vector<16x16xbf16>
    %cst_44 = arith.constant dense<0.000000e+00> : vector<8x16xf32>
    %76 = tpu.matmul %70, %75, %cst_44 {dimension_numbers = #tpu.dot_dimension_numbers<[1], [0], [0], [1], [0, 0, 1, 1], [], []>} : vector<8x16xbf16>, vector<16x16xbf16>, vector<8x16xf32> -> vector<8x16xf32>
    %c2_45 = arith.constant 2 : index
    %c0_46 = arith.constant 0 : index
    %c0_47 = arith.constant 0 : index
    %77 = vector.load %arg16[%c2_45, %c0_46, %c0_47] : memref<9x16x16xbf16, #tpu.memory_space<vmem>>, vector<1x16x16xbf16>
    %78 = vector.shape_cast %77 : vector<1x16x16xbf16> to vector<16x16xbf16>
    %cst_48 = arith.constant dense<0.000000e+00> : vector<8x16xf32>
    %79 = tpu.matmul %70, %78, %cst_48 {dimension_numbers = #tpu.dot_dimension_numbers<[1], [0], [0], [1], [0, 0, 1, 1], [], []>} : vector<8x16xbf16>, vector<16x16xbf16>, vector<8x16xf32> -> vector<8x16xf32>
    %c3_49 = arith.constant 3 : index
    %c0_50 = arith.constant 0 : index
    %c0_51 = arith.constant 0 : index
    %80 = vector.load %arg16[%c3_49, %c0_50, %c0_51] : memref<9x16x16xbf16, #tpu.memory_space<vmem>>, vector<1x16x16xbf16>
    %81 = vector.shape_cast %80 : vector<1x16x16xbf16> to vector<16x16xbf16>
    %cst_52 = arith.constant dense<0.000000e+00> : vector<8x16xf32>
    %82 = tpu.matmul %70, %81, %cst_52 {dimension_numbers = #tpu.dot_dimension_numbers<[1], [0], [0], [1], [0, 0, 1, 1], [], []>} : vector<8x16xbf16>, vector<16x16xbf16>, vector<8x16xf32> -> vector<8x16xf32>
    %c5_53 = arith.constant 5 : index
    %c0_54 = arith.constant 0 : index
    %c0_55 = arith.constant 0 : index
    %83 = vector.load %arg16[%c5_53, %c0_54, %c0_55] : memref<9x16x16xbf16, #tpu.memory_space<vmem>>, vector<1x16x16xbf16>
    %84 = vector.shape_cast %83 : vector<1x16x16xbf16> to vector<16x16xbf16>
    %cst_56 = arith.constant dense<0.000000e+00> : vector<8x16xf32>
    %85 = tpu.matmul %70, %84, %cst_56 {dimension_numbers = #tpu.dot_dimension_numbers<[1], [0], [0], [1], [0, 0, 1, 1], [], []>} : vector<8x16xbf16>, vector<16x16xbf16>, vector<8x16xf32> -> vector<8x16xf32>
    %c6_57 = arith.constant 6 : index
    %c0_58 = arith.constant 0 : index
    %c0_59 = arith.constant 0 : index
    %86 = vector.load %arg16[%c6_57, %c0_58, %c0_59] : memref<9x16x16xbf16, #tpu.memory_space<vmem>>, vector<1x16x16xbf16>
    %87 = vector.shape_cast %86 : vector<1x16x16xbf16> to vector<16x16xbf16>
    %cst_60 = arith.constant dense<0.000000e+00> : vector<8x16xf32>
    %88 = tpu.matmul %70, %87, %cst_60 {dimension_numbers = #tpu.dot_dimension_numbers<[1], [0], [0], [1], [0, 0, 1, 1], [], []>} : vector<8x16xbf16>, vector<16x16xbf16>, vector<8x16xf32> -> vector<8x16xf32>
    %c7_61 = arith.constant 7 : index
    %c0_62 = arith.constant 0 : index
    %c0_63 = arith.constant 0 : index
    %89 = vector.load %arg16[%c7_61, %c0_62, %c0_63] : memref<9x16x16xbf16, #tpu.memory_space<vmem>>, vector<1x16x16xbf16>
    %90 = vector.shape_cast %89 : vector<1x16x16xbf16> to vector<16x16xbf16>
    %cst_64 = arith.constant dense<0.000000e+00> : vector<8x16xf32>
    %91 = tpu.matmul %70, %90, %cst_64 {dimension_numbers = #tpu.dot_dimension_numbers<[1], [0], [0], [1], [0, 0, 1, 1], [], []>} : vector<8x16xbf16>, vector<16x16xbf16>, vector<8x16xf32> -> vector<8x16xf32>
    %c8_65 = arith.constant 8 : index
    %c0_66 = arith.constant 0 : index
    %c0_67 = arith.constant 0 : index
    %92 = vector.load %arg16[%c8_65, %c0_66, %c0_67] : memref<9x16x16xbf16, #tpu.memory_space<vmem>>, vector<1x16x16xbf16>
    %93 = vector.shape_cast %92 : vector<1x16x16xbf16> to vector<16x16xbf16>
    %cst_68 = arith.constant dense<0.000000e+00> : vector<8x16xf32>
    %94 = tpu.matmul %70, %93, %cst_68 {dimension_numbers = #tpu.dot_dimension_numbers<[1], [0], [0], [1], [0, 0, 1, 1], [], []>} : vector<8x16xbf16>, vector<16x16xbf16>, vector<8x16xf32> -> vector<8x16xf32>
    %95 = tpu.concatenate %73, %76, %79, %82, %69, %85, %88, %91, %94 in 0 : vector<8x16xf32>, vector<8x16xf32>, vector<8x16xf32>, vector<8x16xf32>, vector<8x16xf32>, vector<8x16xf32>, vector<8x16xf32>, vector<8x16xf32>, vector<8x16xf32> -> vector<72x16xf32>
    %96 = arith.truncf %95 : vector<72x16xf32> to vector<72x16xbf16>
    %c0_69 = arith.constant 0 : index
    %c0_70 = arith.constant 0 : index
    %c0_71 = arith.constant 0 : index
    %97 = vector.load %arg7[%c0_69, %c0_70, %c0_71] : memref<1x8x72xbf16, #tpu.memory_space<vmem>>, vector<1x8x72xbf16>
    %98 = vector.shape_cast %97 : vector<1x8x72xbf16> to vector<8x72xbf16>
    %cst_72 = arith.constant dense<0.000000e+00> : vector<8x16xf32>
    %99 = tpu.matmul %98, %96, %cst_72 {dimension_numbers = #tpu.dot_dimension_numbers<[1], [0], [0], [1], [0, 0, 1, 1], [], []>} : vector<8x72xbf16>, vector<72x16xbf16>, vector<8x16xf32> -> vector<8x16xf32>
    %c0_73 = arith.constant 0 : index
    %c0_74 = arith.constant 0 : index
    %c0_75 = arith.constant 0 : index
    %100 = vector.load %arg8[%c0_73, %c0_74, %c0_75] : memref<1x8x1xf32, #tpu.memory_space<vmem>>, vector<1x8x1xf32>
    %101 = vector.shape_cast %100 : vector<1x8x1xf32> to vector<8x1xf32>
    %102 = vector.broadcast %101 : vector<8x1xf32> to vector<8x16xf32>
    %103 = arith.addf %99, %102 : vector<8x16xf32>
    %104 = arith.truncf %103 : vector<8x16xf32> to vector<8x16xbf16>
    %c0_76 = arith.constant 0 : index
    %c0_77 = arith.constant 0 : index
    %105 = vector.load %arg17[%c0_76, %c0_77] : memref<16x256xbf16, #tpu.memory_space<vmem>>, vector<16x256xbf16>
    %cst_78 = arith.constant dense<0.000000e+00> : vector<8x256xf32>
    %106 = tpu.matmul %104, %105, %cst_78 {dimension_numbers = #tpu.dot_dimension_numbers<[1], [0], [0], [1], [0, 0, 1, 1], [], []>} : vector<8x16xbf16>, vector<16x256xbf16>, vector<8x256xf32> -> vector<8x256xf32>
    %107 = arith.addf %106, %15 : vector<8x256xf32>
    %108 = arith.negf %107 : vector<8x256xf32>
    %109 = math.exp %108 : vector<8x256xf32>
    %cst_79 = arith.constant 1.000000e+00 : f32
    %110 = vector.broadcast %cst_79 : f32 to vector<8x256xf32>
    %111 = arith.addf %110, %109 : vector<8x256xf32>
    %112 = arith.divf %110, %111 : vector<8x256xf32>
    %c0_80 = arith.constant 0 : index
    %c0_81 = arith.constant 0 : index
    %c0_82 = arith.constant 0 : index
    %113 = vector.load %arg9[%c0_80, %c0_81, %c0_82] : memref<1x8x72xbf16, #tpu.memory_space<vmem>>, vector<1x8x72xbf16>
    %114 = vector.shape_cast %113 : vector<1x8x72xbf16> to vector<8x72xbf16>
    %c17_i32_83 = arith.constant 17 : i32
    %115 = tpu.dynamic_rotate %15 by %c17_i32_83 dim 1 : vector<8x256xf32>, i32 -> vector<8x256xf32>
    %c0_84 = arith.constant 0 : index
    %c0_85 = arith.constant 0 : index
    %c0_86 = arith.constant 0 : index
    %116 = vector.load %arg18[%c0_84, %c0_85, %c0_86] : memref<9x1x256xf32, #tpu.memory_space<vmem>>, vector<1x1x256xf32>
    %117 = vector.shape_cast %116 : vector<1x1x256xf32> to vector<1x256xf32>
    %118 = vector.broadcast %117 : vector<1x256xf32> to vector<8x256xf32>
    %119 = arith.mulf %115, %118 : vector<8x256xf32>
    %c16_i32_87 = arith.constant 16 : i32
    %120 = tpu.dynamic_rotate %15 by %c16_i32_87 dim 1 : vector<8x256xf32>, i32 -> vector<8x256xf32>
    %c1_88 = arith.constant 1 : index
    %c0_89 = arith.constant 0 : index
    %c0_90 = arith.constant 0 : index
    %121 = vector.load %arg18[%c1_88, %c0_89, %c0_90] : memref<9x1x256xf32, #tpu.memory_space<vmem>>, vector<1x1x256xf32>
    %122 = vector.shape_cast %121 : vector<1x1x256xf32> to vector<1x256xf32>
    %123 = vector.broadcast %122 : vector<1x256xf32> to vector<8x256xf32>
    %124 = arith.mulf %120, %123 : vector<8x256xf32>
    %c15_i32_91 = arith.constant 15 : i32
    %125 = tpu.dynamic_rotate %15 by %c15_i32_91 dim 1 : vector<8x256xf32>, i32 -> vector<8x256xf32>
    %c2_92 = arith.constant 2 : index
    %c0_93 = arith.constant 0 : index
    %c0_94 = arith.constant 0 : index
    %126 = vector.load %arg18[%c2_92, %c0_93, %c0_94] : memref<9x1x256xf32, #tpu.memory_space<vmem>>, vector<1x1x256xf32>
    %127 = vector.shape_cast %126 : vector<1x1x256xf32> to vector<1x256xf32>
    %128 = vector.broadcast %127 : vector<1x256xf32> to vector<8x256xf32>
    %129 = arith.mulf %125, %128 : vector<8x256xf32>
    %c1_i32_95 = arith.constant 1 : i32
    %130 = tpu.dynamic_rotate %15 by %c1_i32_95 dim 1 : vector<8x256xf32>, i32 -> vector<8x256xf32>
    %c3_96 = arith.constant 3 : index
    %c0_97 = arith.constant 0 : index
    %c0_98 = arith.constant 0 : index
    %131 = vector.load %arg18[%c3_96, %c0_97, %c0_98] : memref<9x1x256xf32, #tpu.memory_space<vmem>>, vector<1x1x256xf32>
    %132 = vector.shape_cast %131 : vector<1x1x256xf32> to vector<1x256xf32>
    %133 = vector.broadcast %132 : vector<1x256xf32> to vector<8x256xf32>
    %134 = arith.mulf %130, %133 : vector<8x256xf32>
    %c255_i32_99 = arith.constant 255 : i32
    %135 = tpu.dynamic_rotate %15 by %c255_i32_99 dim 1 : vector<8x256xf32>, i32 -> vector<8x256xf32>
    %c5_100 = arith.constant 5 : index
    %c0_101 = arith.constant 0 : index
    %c0_102 = arith.constant 0 : index
    %136 = vector.load %arg18[%c5_100, %c0_101, %c0_102] : memref<9x1x256xf32, #tpu.memory_space<vmem>>, vector<1x1x256xf32>
    %137 = vector.shape_cast %136 : vector<1x1x256xf32> to vector<1x256xf32>
    %138 = vector.broadcast %137 : vector<1x256xf32> to vector<8x256xf32>
    %139 = arith.mulf %135, %138 : vector<8x256xf32>
    %c241_i32_103 = arith.constant 241 : i32
    %140 = tpu.dynamic_rotate %15 by %c241_i32_103 dim 1 : vector<8x256xf32>, i32 -> vector<8x256xf32>
    %c6_104 = arith.constant 6 : index
    %c0_105 = arith.constant 0 : index
    %c0_106 = arith.constant 0 : index
    %141 = vector.load %arg18[%c6_104, %c0_105, %c0_106] : memref<9x1x256xf32, #tpu.memory_space<vmem>>, vector<1x1x256xf32>
    %142 = vector.shape_cast %141 : vector<1x1x256xf32> to vector<1x256xf32>
    %143 = vector.broadcast %142 : vector<1x256xf32> to vector<8x256xf32>
    %144 = arith.mulf %140, %143 : vector<8x256xf32>
    %c240_i32_107 = arith.constant 240 : i32
    %145 = tpu.dynamic_rotate %15 by %c240_i32_107 dim 1 : vector<8x256xf32>, i32 -> vector<8x256xf32>
    %c7_108 = arith.constant 7 : index
    %c0_109 = arith.constant 0 : index
    %c0_110 = arith.constant 0 : index
    %146 = vector.load %arg18[%c7_108, %c0_109, %c0_110] : memref<9x1x256xf32, #tpu.memory_space<vmem>>, vector<1x1x256xf32>
    %147 = vector.shape_cast %146 : vector<1x1x256xf32> to vector<1x256xf32>
    %148 = vector.broadcast %147 : vector<1x256xf32> to vector<8x256xf32>
    %149 = arith.mulf %145, %148 : vector<8x256xf32>
    %c239_i32_111 = arith.constant 239 : i32
    %150 = tpu.dynamic_rotate %15 by %c239_i32_111 dim 1 : vector<8x256xf32>, i32 -> vector<8x256xf32>
    %c8_112 = arith.constant 8 : index
    %c0_113 = arith.constant 0 : index
    %c0_114 = arith.constant 0 : index
    %151 = vector.load %arg18[%c8_112, %c0_113, %c0_114] : memref<9x1x256xf32, #tpu.memory_space<vmem>>, vector<1x1x256xf32>
    %152 = vector.shape_cast %151 : vector<1x1x256xf32> to vector<1x256xf32>
    %153 = vector.broadcast %152 : vector<1x256xf32> to vector<8x256xf32>
    %154 = arith.mulf %150, %153 : vector<8x256xf32>
    %155 = tpu.concatenate %119, %124, %129, %134, %15, %139, %144, %149, %154 in 0 : vector<8x256xf32>, vector<8x256xf32>, vector<8x256xf32>, vector<8x256xf32>, vector<8x256xf32>, vector<8x256xf32>, vector<8x256xf32>, vector<8x256xf32>, vector<8x256xf32> -> vector<72x256xf32>
    %156 = arith.truncf %155 : vector<72x256xf32> to vector<72x256xbf16>
    %cst_115 = arith.constant dense<0.000000e+00> : vector<8x256xf32>
    %157 = tpu.matmul %114, %156, %cst_115 {dimension_numbers = #tpu.dot_dimension_numbers<[1], [0], [0], [1], [0, 0, 1, 1], [], []>} : vector<8x72xbf16>, vector<72x256xbf16>, vector<8x256xf32> -> vector<8x256xf32>
    %c0_116 = arith.constant 0 : index
    %c0_117 = arith.constant 0 : index
    %c0_118 = arith.constant 0 : index
    %158 = vector.load %arg10[%c0_116, %c0_117, %c0_118] : memref<1x8x1xf32, #tpu.memory_space<vmem>>, vector<1x8x1xf32>
    %159 = vector.shape_cast %158 : vector<1x8x1xf32> to vector<8x1xf32>
    %160 = vector.broadcast %159 : vector<8x1xf32> to vector<8x256xf32>
    %161 = arith.addf %157, %160 : vector<8x256xf32>
    %162 = arith.mulf %161, %112 : vector<8x256xf32>
    %c0_119 = arith.constant 0 : index
    %c0_120 = arith.constant 0 : index
    %c0_121 = arith.constant 0 : index
    %163 = vector.load %arg11[%c0_119, %c0_120, %c0_121] : memref<1x8x72xbf16, #tpu.memory_space<vmem>>, vector<1x8x72xbf16>
    %164 = vector.shape_cast %163 : vector<1x8x72xbf16> to vector<8x72xbf16>
    %c17_i32_122 = arith.constant 17 : i32
    %165 = tpu.dynamic_rotate %162 by %c17_i32_122 dim 1 : vector<8x256xf32>, i32 -> vector<8x256xf32>
    %c0_123 = arith.constant 0 : index
    %c0_124 = arith.constant 0 : index
    %c0_125 = arith.constant 0 : index
    %166 = vector.load %arg18[%c0_123, %c0_124, %c0_125] : memref<9x1x256xf32, #tpu.memory_space<vmem>>, vector<1x1x256xf32>
    %167 = vector.shape_cast %166 : vector<1x1x256xf32> to vector<1x256xf32>
    %168 = vector.broadcast %167 : vector<1x256xf32> to vector<8x256xf32>
    %169 = arith.mulf %165, %168 : vector<8x256xf32>
    %c16_i32_126 = arith.constant 16 : i32
    %170 = tpu.dynamic_rotate %162 by %c16_i32_126 dim 1 : vector<8x256xf32>, i32 -> vector<8x256xf32>
    %c1_127 = arith.constant 1 : index
    %c0_128 = arith.constant 0 : index
    %c0_129 = arith.constant 0 : index
    %171 = vector.load %arg18[%c1_127, %c0_128, %c0_129] : memref<9x1x256xf32, #tpu.memory_space<vmem>>, vector<1x1x256xf32>
    %172 = vector.shape_cast %171 : vector<1x1x256xf32> to vector<1x256xf32>
    %173 = vector.broadcast %172 : vector<1x256xf32> to vector<8x256xf32>
    %174 = arith.mulf %170, %173 : vector<8x256xf32>
    %c15_i32_130 = arith.constant 15 : i32
    %175 = tpu.dynamic_rotate %162 by %c15_i32_130 dim 1 : vector<8x256xf32>, i32 -> vector<8x256xf32>
    %c2_131 = arith.constant 2 : index
    %c0_132 = arith.constant 0 : index
    %c0_133 = arith.constant 0 : index
    %176 = vector.load %arg18[%c2_131, %c0_132, %c0_133] : memref<9x1x256xf32, #tpu.memory_space<vmem>>, vector<1x1x256xf32>
    %177 = vector.shape_cast %176 : vector<1x1x256xf32> to vector<1x256xf32>
    %178 = vector.broadcast %177 : vector<1x256xf32> to vector<8x256xf32>
    %179 = arith.mulf %175, %178 : vector<8x256xf32>
    %c1_i32_134 = arith.constant 1 : i32
    %180 = tpu.dynamic_rotate %162 by %c1_i32_134 dim 1 : vector<8x256xf32>, i32 -> vector<8x256xf32>
    %c3_135 = arith.constant 3 : index
    %c0_136 = arith.constant 0 : index
    %c0_137 = arith.constant 0 : index
    %181 = vector.load %arg18[%c3_135, %c0_136, %c0_137] : memref<9x1x256xf32, #tpu.memory_space<vmem>>, vector<1x1x256xf32>
    %182 = vector.shape_cast %181 : vector<1x1x256xf32> to vector<1x256xf32>
    %183 = vector.broadcast %182 : vector<1x256xf32> to vector<8x256xf32>
    %184 = arith.mulf %180, %183 : vector<8x256xf32>
    %c255_i32_138 = arith.constant 255 : i32
    %185 = tpu.dynamic_rotate %162 by %c255_i32_138 dim 1 : vector<8x256xf32>, i32 -> vector<8x256xf32>
    %c5_139 = arith.constant 5 : index
    %c0_140 = arith.constant 0 : index
    %c0_141 = arith.constant 0 : index
    %186 = vector.load %arg18[%c5_139, %c0_140, %c0_141] : memref<9x1x256xf32, #tpu.memory_space<vmem>>, vector<1x1x256xf32>
    %187 = vector.shape_cast %186 : vector<1x1x256xf32> to vector<1x256xf32>
    %188 = vector.broadcast %187 : vector<1x256xf32> to vector<8x256xf32>
    %189 = arith.mulf %185, %188 : vector<8x256xf32>
    %c241_i32_142 = arith.constant 241 : i32
    %190 = tpu.dynamic_rotate %162 by %c241_i32_142 dim 1 : vector<8x256xf32>, i32 -> vector<8x256xf32>
    %c6_143 = arith.constant 6 : index
    %c0_144 = arith.constant 0 : index
    %c0_145 = arith.constant 0 : index
    %191 = vector.load %arg18[%c6_143, %c0_144, %c0_145] : memref<9x1x256xf32, #tpu.memory_space<vmem>>, vector<1x1x256xf32>
    %192 = vector.shape_cast %191 : vector<1x1x256xf32> to vector<1x256xf32>
    %193 = vector.broadcast %192 : vector<1x256xf32> to vector<8x256xf32>
    %194 = arith.mulf %190, %193 : vector<8x256xf32>
    %c240_i32_146 = arith.constant 240 : i32
    %195 = tpu.dynamic_rotate %162 by %c240_i32_146 dim 1 : vector<8x256xf32>, i32 -> vector<8x256xf32>
    %c7_147 = arith.constant 7 : index
    %c0_148 = arith.constant 0 : index
    %c0_149 = arith.constant 0 : index
    %196 = vector.load %arg18[%c7_147, %c0_148, %c0_149] : memref<9x1x256xf32, #tpu.memory_space<vmem>>, vector<1x1x256xf32>
    %197 = vector.shape_cast %196 : vector<1x1x256xf32> to vector<1x256xf32>
    %198 = vector.broadcast %197 : vector<1x256xf32> to vector<8x256xf32>
    %199 = arith.mulf %195, %198 : vector<8x256xf32>
    %c239_i32_150 = arith.constant 239 : i32
    %200 = tpu.dynamic_rotate %162 by %c239_i32_150 dim 1 : vector<8x256xf32>, i32 -> vector<8x256xf32>
    %c8_151 = arith.constant 8 : index
    %c0_152 = arith.constant 0 : index
    %c0_153 = arith.constant 0 : index
    %201 = vector.load %arg18[%c8_151, %c0_152, %c0_153] : memref<9x1x256xf32, #tpu.memory_space<vmem>>, vector<1x1x256xf32>
    %202 = vector.shape_cast %201 : vector<1x1x256xf32> to vector<1x256xf32>
    %203 = vector.broadcast %202 : vector<1x256xf32> to vector<8x256xf32>
    %204 = arith.mulf %200, %203 : vector<8x256xf32>
    %205 = tpu.concatenate %169, %174, %179, %184, %162, %189, %194, %199, %204 in 0 : vector<8x256xf32>, vector<8x256xf32>, vector<8x256xf32>, vector<8x256xf32>, vector<8x256xf32>, vector<8x256xf32>, vector<8x256xf32>, vector<8x256xf32>, vector<8x256xf32> -> vector<72x256xf32>
    %206 = arith.truncf %205 : vector<72x256xf32> to vector<72x256xbf16>
    %cst_154 = arith.constant dense<0.000000e+00> : vector<8x256xf32>
    %207 = tpu.matmul %164, %206, %cst_154 {dimension_numbers = #tpu.dot_dimension_numbers<[1], [0], [0], [1], [0, 0, 1, 1], [], []>} : vector<8x72xbf16>, vector<72x256xbf16>, vector<8x256xf32> -> vector<8x256xf32>
    %c0_155 = arith.constant 0 : index
    %c0_156 = arith.constant 0 : index
    %c0_157 = arith.constant 0 : index
    %208 = vector.load %arg12[%c0_155, %c0_156, %c0_157] : memref<1x8x1xf32, #tpu.memory_space<vmem>>, vector<1x8x1xf32>
    %209 = vector.shape_cast %208 : vector<1x8x1xf32> to vector<8x1xf32>
    %210 = vector.broadcast %209 : vector<8x1xf32> to vector<8x256xf32>
    %211 = arith.addf %207, %210 : vector<8x256xf32>
    %cst_158 = arith.constant 0.000000e+00 : f32
    %212 = vector.broadcast %cst_158 : f32 to vector<8x256xf32>
    %213 = arith.maximumf %211, %212 : vector<8x256xf32>
    %214 = tpu.concatenate %66, %213 in 0 : vector<8x256xf32>, vector<8x256xf32> -> vector<16x256xf32>
    %c0_159 = arith.constant 0 : index
    %c0_160 = arith.constant 0 : index
    %c0_161 = arith.constant 0 : index
    %215 = vector.load %arg13[%c0_159, %c0_160, %c0_161] : memref<1x16x144xbf16, #tpu.memory_space<vmem>>, vector<1x16x144xbf16>
    %216 = vector.shape_cast %215 : vector<1x16x144xbf16> to vector<16x144xbf16>
    %c17_i32_162 = arith.constant 17 : i32
    %217 = tpu.dynamic_rotate %214 by %c17_i32_162 dim 1 : vector<16x256xf32>, i32 -> vector<16x256xf32>
    %c0_163 = arith.constant 0 : index
    %c0_164 = arith.constant 0 : index
    %c0_165 = arith.constant 0 : index
    %218 = vector.load %arg18[%c0_163, %c0_164, %c0_165] : memref<9x1x256xf32, #tpu.memory_space<vmem>>, vector<1x1x256xf32>
    %219 = vector.shape_cast %218 : vector<1x1x256xf32> to vector<1x256xf32>
    %220 = vector.broadcast %219 : vector<1x256xf32> to vector<16x256xf32>
    %221 = arith.mulf %217, %220 : vector<16x256xf32>
    %c16_i32_166 = arith.constant 16 : i32
    %222 = tpu.dynamic_rotate %214 by %c16_i32_166 dim 1 : vector<16x256xf32>, i32 -> vector<16x256xf32>
    %c1_167 = arith.constant 1 : index
    %c0_168 = arith.constant 0 : index
    %c0_169 = arith.constant 0 : index
    %223 = vector.load %arg18[%c1_167, %c0_168, %c0_169] : memref<9x1x256xf32, #tpu.memory_space<vmem>>, vector<1x1x256xf32>
    %224 = vector.shape_cast %223 : vector<1x1x256xf32> to vector<1x256xf32>
    %225 = vector.broadcast %224 : vector<1x256xf32> to vector<16x256xf32>
    %226 = arith.mulf %222, %225 : vector<16x256xf32>
    %c15_i32_170 = arith.constant 15 : i32
    %227 = tpu.dynamic_rotate %214 by %c15_i32_170 dim 1 : vector<16x256xf32>, i32 -> vector<16x256xf32>
    %c2_171 = arith.constant 2 : index
    %c0_172 = arith.constant 0 : index
    %c0_173 = arith.constant 0 : index
    %228 = vector.load %arg18[%c2_171, %c0_172, %c0_173] : memref<9x1x256xf32, #tpu.memory_space<vmem>>, vector<1x1x256xf32>
    %229 = vector.shape_cast %228 : vector<1x1x256xf32> to vector<1x256xf32>
    %230 = vector.broadcast %229 : vector<1x256xf32> to vector<16x256xf32>
    %231 = arith.mulf %227, %230 : vector<16x256xf32>
    %c1_i32_174 = arith.constant 1 : i32
    %232 = tpu.dynamic_rotate %214 by %c1_i32_174 dim 1 : vector<16x256xf32>, i32 -> vector<16x256xf32>
    %c3_175 = arith.constant 3 : index
    %c0_176 = arith.constant 0 : index
    %c0_177 = arith.constant 0 : index
    %233 = vector.load %arg18[%c3_175, %c0_176, %c0_177] : memref<9x1x256xf32, #tpu.memory_space<vmem>>, vector<1x1x256xf32>
    %234 = vector.shape_cast %233 : vector<1x1x256xf32> to vector<1x256xf32>
    %235 = vector.broadcast %234 : vector<1x256xf32> to vector<16x256xf32>
    %236 = arith.mulf %232, %235 : vector<16x256xf32>
    %c255_i32_178 = arith.constant 255 : i32
    %237 = tpu.dynamic_rotate %214 by %c255_i32_178 dim 1 : vector<16x256xf32>, i32 -> vector<16x256xf32>
    %c5_179 = arith.constant 5 : index
    %c0_180 = arith.constant 0 : index
    %c0_181 = arith.constant 0 : index
    %238 = vector.load %arg18[%c5_179, %c0_180, %c0_181] : memref<9x1x256xf32, #tpu.memory_space<vmem>>, vector<1x1x256xf32>
    %239 = vector.shape_cast %238 : vector<1x1x256xf32> to vector<1x256xf32>
    %240 = vector.broadcast %239 : vector<1x256xf32> to vector<16x256xf32>
    %241 = arith.mulf %237, %240 : vector<16x256xf32>
    %c241_i32_182 = arith.constant 241 : i32
    %242 = tpu.dynamic_rotate %214 by %c241_i32_182 dim 1 : vector<16x256xf32>, i32 -> vector<16x256xf32>
    %c6_183 = arith.constant 6 : index
    %c0_184 = arith.constant 0 : index
    %c0_185 = arith.constant 0 : index
    %243 = vector.load %arg18[%c6_183, %c0_184, %c0_185] : memref<9x1x256xf32, #tpu.memory_space<vmem>>, vector<1x1x256xf32>
    %244 = vector.shape_cast %243 : vector<1x1x256xf32> to vector<1x256xf32>
    %245 = vector.broadcast %244 : vector<1x256xf32> to vector<16x256xf32>
    %246 = arith.mulf %242, %245 : vector<16x256xf32>
    %c240_i32_186 = arith.constant 240 : i32
    %247 = tpu.dynamic_rotate %214 by %c240_i32_186 dim 1 : vector<16x256xf32>, i32 -> vector<16x256xf32>
    %c7_187 = arith.constant 7 : index
    %c0_188 = arith.constant 0 : index
    %c0_189 = arith.constant 0 : index
    %248 = vector.load %arg18[%c7_187, %c0_188, %c0_189] : memref<9x1x256xf32, #tpu.memory_space<vmem>>, vector<1x1x256xf32>
    %249 = vector.shape_cast %248 : vector<1x1x256xf32> to vector<1x256xf32>
    %250 = vector.broadcast %249 : vector<1x256xf32> to vector<16x256xf32>
    %251 = arith.mulf %247, %250 : vector<16x256xf32>
    %c239_i32_190 = arith.constant 239 : i32
    %252 = tpu.dynamic_rotate %214 by %c239_i32_190 dim 1 : vector<16x256xf32>, i32 -> vector<16x256xf32>
    %c8_191 = arith.constant 8 : index
    %c0_192 = arith.constant 0 : index
    %c0_193 = arith.constant 0 : index
    %253 = vector.load %arg18[%c8_191, %c0_192, %c0_193] : memref<9x1x256xf32, #tpu.memory_space<vmem>>, vector<1x1x256xf32>
    %254 = vector.shape_cast %253 : vector<1x1x256xf32> to vector<1x256xf32>
    %255 = vector.broadcast %254 : vector<1x256xf32> to vector<16x256xf32>
    %256 = arith.mulf %252, %255 : vector<16x256xf32>
    %257 = tpu.concatenate %221, %226, %231, %236, %214, %241, %246, %251, %256 in 0 : vector<16x256xf32>, vector<16x256xf32>, vector<16x256xf32>, vector<16x256xf32>, vector<16x256xf32>, vector<16x256xf32>, vector<16x256xf32>, vector<16x256xf32>, vector<16x256xf32> -> vector<144x256xf32>
    %258 = arith.truncf %257 : vector<144x256xf32> to vector<144x256xbf16>
    %cst_194 = arith.constant dense<0.000000e+00> : vector<16x256xf32>
    %259 = tpu.matmul %216, %258, %cst_194 {dimension_numbers = #tpu.dot_dimension_numbers<[1], [0], [0], [1], [0, 0, 1, 1], [], []>} : vector<16x144xbf16>, vector<144x256xbf16>, vector<16x256xf32> -> vector<16x256xf32>
    %c0_195 = arith.constant 0 : index
    %c0_196 = arith.constant 0 : index
    %c0_197 = arith.constant 0 : index
    %260 = vector.load %arg14[%c0_195, %c0_196, %c0_197] : memref<1x16x1xf32, #tpu.memory_space<vmem>>, vector<1x16x1xf32>
    %261 = vector.shape_cast %260 : vector<1x16x1xf32> to vector<16x1xf32>
    %262 = vector.broadcast %261 : vector<16x1xf32> to vector<16x256xf32>
    %263 = arith.addf %259, %262 : vector<16x256xf32>
    %264 = arith.addf %263, %3 : vector<16x256xf32>
    %cst_198 = arith.constant 0.000000e+00 : f32
    %265 = vector.broadcast %cst_198 : f32 to vector<16x256xf32>
    %266 = arith.maximumf %264, %265 : vector<16x256xf32>
    %c0_199 = arith.constant 0 : index
    %c0_200 = arith.constant 0 : index
    %267 = vector.load %arg20[%c0_199, %c0_200] : memref<16x256xf32, #tpu.memory_space<vmem>>, vector<16x256xf32>
    tpu.vector_store %arg20[%c0_199, %c0_200], %266 {strides = array<i32>} : memref<16x256xf32, #tpu.memory_space<vmem>>, vector<16x256xf32>,
    %c1_i32_201 = arith.constant 1 : i32
    %268 = arith.cmpi eq, %arg1, %c1_i32_201 : i32
    %269 = arith.extui %268 : i1 to i32
    %c0_i32_202 = arith.constant 0 : i32
    %270 = arith.cmpi ne, %269, %c0_i32_202 : i32
    scf.if %270 {
      %c0_203 = arith.constant 0 : index
      %c0_204 = arith.constant 0 : index
      %c0_205 = arith.constant 0 : index
      %271 = vector.load %arg19[%c0_203, %c0_204, %c0_205] : memref<1x16x256xf32, #tpu.memory_space<vmem>>, vector<1x16x256xf32>
      %272 = vector.shape_cast %271 : vector<1x16x256xf32> to vector<16x256xf32>
      %273 = vector.shape_cast %266 : vector<16x256xf32> to vector<1x16x256xf32>
      tpu.vector_store %arg19[%c0_203, %c0_204, %c0_205], %273 {strides = array<i32>} : memref<1x16x256xf32, #tpu.memory_space<vmem>>, vector<1x16x256xf32>,
    } else {
    }
    return
  }
  func.func @transform_0(%arg0: i32, %arg1: i32) -> (i32, i32, i32) {
    %c0_i32 = arith.constant 0 : i32
    %c0_i32_0 = arith.constant 0 : i32
    %c0_i32_1 = arith.constant 0 : i32
    return %arg0, %c0_i32, %c0_i32_0 : i32, i32, i32
  }
  func.func @transform_1(%arg0: i32, %arg1: i32) -> (i32, i32, i32) {
    %c0_i32 = arith.constant 0 : i32
    %c0_i32_0 = arith.constant 0 : i32
    %c0_i32_1 = arith.constant 0 : i32
    return %arg1, %c0_i32, %c0_i32_0 : i32, i32, i32
  }
  func.func @transform_2(%arg0: i32, %arg1: i32) -> (i32, i32, i32) {
    %c0_i32 = arith.constant 0 : i32
    %c0_i32_0 = arith.constant 0 : i32
    %c0_i32_1 = arith.constant 0 : i32
    return %arg1, %c0_i32, %c0_i32_0 : i32, i32, i32
  }
  func.func @transform_3(%arg0: i32, %arg1: i32) -> (i32, i32, i32) {
    %c0_i32 = arith.constant 0 : i32
    %c0_i32_0 = arith.constant 0 : i32
    %c0_i32_1 = arith.constant 0 : i32
    return %arg1, %c0_i32, %c0_i32_0 : i32, i32, i32
  }
  func.func @transform_4(%arg0: i32, %arg1: i32) -> (i32, i32, i32) {
    %c0_i32 = arith.constant 0 : i32
    %c0_i32_0 = arith.constant 0 : i32
    %c0_i32_1 = arith.constant 0 : i32
    return %arg1, %c0_i32, %c0_i32_0 : i32, i32, i32
  }
  func.func @transform_5(%arg0: i32, %arg1: i32) -> (i32, i32, i32) {
    %c0_i32 = arith.constant 0 : i32
    %c0_i32_0 = arith.constant 0 : i32
    %c0_i32_1 = arith.constant 0 : i32
    return %arg1, %c0_i32, %c0_i32_0 : i32, i32, i32
  }
  func.func @transform_6(%arg0: i32, %arg1: i32) -> (i32, i32, i32) {
    %c0_i32 = arith.constant 0 : i32
    %c0_i32_0 = arith.constant 0 : i32
    %c0_i32_1 = arith.constant 0 : i32
    return %arg1, %c0_i32, %c0_i32_0 : i32, i32, i32
  }
  func.func @transform_7(%arg0: i32, %arg1: i32) -> (i32, i32, i32) {
    %c0_i32 = arith.constant 0 : i32
    %c0_i32_0 = arith.constant 0 : i32
    %c0_i32_1 = arith.constant 0 : i32
    return %arg1, %c0_i32, %c0_i32_0 : i32, i32, i32
  }
  func.func @transform_8(%arg0: i32, %arg1: i32) -> (i32, i32, i32) {
    %c0_i32 = arith.constant 0 : i32
    %c0_i32_0 = arith.constant 0 : i32
    %c0_i32_1 = arith.constant 0 : i32
    return %arg1, %c0_i32, %c0_i32_0 : i32, i32, i32
  }
  func.func @transform_9(%arg0: i32, %arg1: i32) -> (i32, i32, i32) {
    %c0_i32 = arith.constant 0 : i32
    %c0_i32_0 = arith.constant 0 : i32
    %c0_i32_1 = arith.constant 0 : i32
    return %arg1, %c0_i32, %c0_i32_0 : i32, i32, i32
  }
  func.func @transform_10(%arg0: i32, %arg1: i32) -> (i32, i32, i32) {
    %c0_i32 = arith.constant 0 : i32
    %c0_i32_0 = arith.constant 0 : i32
    %c0_i32_1 = arith.constant 0 : i32
    return %arg1, %c0_i32, %c0_i32_0 : i32, i32, i32
  }
  func.func @transform_11(%arg0: i32, %arg1: i32) -> (i32, i32, i32) {
    %c0_i32 = arith.constant 0 : i32
    %c0_i32_0 = arith.constant 0 : i32
    %c0_i32_1 = arith.constant 0 : i32
    return %arg1, %c0_i32, %c0_i32_0 : i32, i32, i32
  }
  func.func @transform_12(%arg0: i32, %arg1: i32) -> (i32, i32, i32) {
    %c0_i32 = arith.constant 0 : i32
    %c0_i32_0 = arith.constant 0 : i32
    %c0_i32_1 = arith.constant 0 : i32
    return %arg1, %c0_i32, %c0_i32_0 : i32, i32, i32
  }
  func.func @transform_13(%arg0: i32, %arg1: i32) -> (i32, i32) {
    %c0_i32 = arith.constant 0 : i32
    %c0_i32_0 = arith.constant 0 : i32
    %c0_i32_1 = arith.constant 0 : i32
    return %c0_i32, %c0_i32_0 : i32, i32
  }
  func.func @transform_14(%arg0: i32, %arg1: i32) -> (i32, i32, i32) {
    %c0_i32 = arith.constant 0 : i32
    %c0_i32_0 = arith.constant 0 : i32
    %c0_i32_1 = arith.constant 0 : i32
    %c0_i32_2 = arith.constant 0 : i32
    return %c0_i32, %c0_i32_0, %c0_i32_1 : i32, i32, i32
  }
  func.func @transform_15(%arg0: i32, %arg1: i32) -> (i32, i32) {
    %c0_i32 = arith.constant 0 : i32
    %c0_i32_0 = arith.constant 0 : i32
    %c0_i32_1 = arith.constant 0 : i32
    return %c0_i32, %c0_i32_0 : i32, i32
  }
  func.func @transform_16(%arg0: i32, %arg1: i32) -> (i32, i32, i32) {
    %c0_i32 = arith.constant 0 : i32
    %c0_i32_0 = arith.constant 0 : i32
    %c0_i32_1 = arith.constant 0 : i32
    %c0_i32_2 = arith.constant 0 : i32
    return %c0_i32, %c0_i32_0, %c0_i32_1 : i32, i32, i32
  }
  func.func @transform_17(%arg0: i32, %arg1: i32) -> (i32, i32, i32) {
    %c0_i32 = arith.constant 0 : i32
    %c0_i32_0 = arith.constant 0 : i32
    %c0_i32_1 = arith.constant 0 : i32
    return %arg0, %c0_i32, %c0_i32_0 : i32, i32, i32
  }
}

</mosaic_0001>

<bundles_post_ra>
// kernel: scblock_forward.2
= control target key start
LH: loop header
LB: loop body
LE: loop exit
PB: predicated region body
PF: predicated region fallthrough
CT: control target
= control target key end

     0   :  { %s609_s15 = smov 0   ;;  %s715_s0 = inlined_call_operand.vmem [shape: f32[2,8,256], index: 0, kind: input, shape index: {}]   ;;  %s716_s1 = inlined_call_operand.vmem [shape: bf16[16,72], index: 1, kind: input, shape index: {}]   ;;  %s717_s2 = inlined_call_operand.vmem [shape: f32[16,1], index: 2, kind: input, shape index: {}]   ;;  %s718_s3 = inlined_call_operand.vmem [shape: f32[9,1,256], index: 3, kind: input, shape index: {}]   ;;  %s719_s4 = inlined_call_operand.vmem [shape: f32[2,16,256], index: 4, kind: output, shape index: {}]  }
   0x1 LB: > { %s524_s16 = sadd.s32 4294967295, %s573_s15   ;;  %p528_p0 = scmp.ge.s32.totalorder %s573_s15, 1  ;;  %s573_s15 = sphi %s609_s15, %s14_s15  }
   0x2   : > { %p162_p1 = scmp.lt.s32.totalorder %s573_s15, 3 }
   0x4   : > { %p163_p2 = pnand %p528_p0, %p162_p1 }
   0x5   : > { %p188_p3 = scmp.lt.s32.totalorder (!%p163_p2), %s524_s16, 1  ;;  %s575_s21 = smov (!%p163_p2), 16   ;;  %v581_v2 = vmov (!%p163_p2), 0   ;;  %v390_v3 = vld [vmem:[%s717_s2] sm:$0xff] (!%p163_p2)  ;;  %v391_v4 = vld [vmem:[%s717_s2 + $0x8] sm:$0xff] (!%p163_p2)  ;;  %v205_v5 = vlaneseq (!%p163_p2)  ;;  %vm411_vm8 = vcmask (!%p163_p2), 1043456  }
   0x6   : > { %166 = sbr.rel (%p163_p2) target bundleno = 389 (0x185), region = 36  ;;  %s576_s22 = smov (!%p163_p2), 17   ;;  %450 = vmatprep.mubr.bf16.mxu0 (!%p163_p2), %v581_v2  ;;  %564 = vset.pattern.permute.xlu0 (!%p163_p2), %v581_v2  ;;  %v533_v10 = vld [vmem:[%s718_s3 + $0x2] sm:$0x3] (!%p163_p2)  ;;  %v210_v11 = vld [vmem:[%s718_s3] sm:$0x3] (!%p163_p2) }
   0x7   : > { %s577_s23 = smov (!%p163_p2), 15   ;;  %s578_s24 = smov (!%p163_p2), 1   ;;  %565 = vset.pattern.permute.xlu1 (!%p163_p2), %v581_v2  ;;  %v213_v6 = vshrl.u32 (!%p163_p2), %v205_v5, 7  ;;  %v649_v7 = vand.u32 (!%p163_p2), 127, %v205_v5  ;;  %v534_v28 = vld [vmem:[%s718_s3 + $0x4] sm:$0x3] (!%p163_p2) }
   0x8   : > { %s579_s25 = smov (!%p163_p2), 127   ;;  %s580_s26 = smov (!%p163_p2), 113   ;;  %v535_v29 = vld [vmem:[%s718_s3 + $0x6] sm:$0x3] (!%p163_p2)  ;;  %v536_v38 = vld [vmem:[%s718_s3 + $0xa] sm:$0x3] (!%p163_p2) }
   0x9   : > { %s582_s27 = smov (!%p163_p2), 112   ;;  %s583_s28 = smov (!%p163_p2), 111   ;;  %v651_v8 = vsub.s32 (!%p163_p2), 0, %v213_v6  ;;  %v653_v9 = vsub.s32 (!%p163_p2), 1, %v213_v6  ;;  %vm228_vm0 = vcmp.lt.s32.totalorder (!%p163_p2), %v649_v7, 16  ;;  %vm207_vm1 = vcmp.lt.s32.totalorder (!%p163_p2), %v649_v7, 17 }
   0xa   : > { %vm250_vm2 = vcmp.lt.s32.totalorder (!%p163_p2), %v649_v7, 15  ;;  %vm272_vm3 = vcmp.lt.s32.totalorder (!%p163_p2), %v649_v7, 1  ;;  %vm294_vm4 = vcmp.lt.s32.totalorder (!%p163_p2), %v649_v7, 127  ;;  %v537_v59 = vld [vmem:[%s718_s3 + $0xc] sm:$0x3] (!%p163_p2)  ;;  %vm316_vm5 = vcmp.lt.s32.totalorder (!%p163_p2), %v649_v7, 113 }
   0xb   : > { %v237_v14 = vrot.slane (!%p163_p2), %v533_v10, %v651_v8  ;;  %v215_v15 = vrot.slane (!%p163_p2), %v210_v11, %v651_v8  ;;  %v219_v16 = vrot.slane (!%p163_p2), %v210_v11, %v653_v9  ;;  %v241_v17 = vrot.slane (!%p163_p2), %v533_v10, %v653_v9  ;;  %v538_v60 = vld [vmem:[%s718_s3 + $0xe] sm:$0x3] (!%p163_p2)  ;;  %v539_v10 = vld [vmem:[%s718_s3 + $0x10] sm:$0x3] (!%p163_p2) }
   0xc   : > { %v259_v34 = vrot.slane (!%p163_p2), %v534_v28, %v651_v8  ;;  %v263_v35 = vrot.slane (!%p163_p2), %v534_v28, %v653_v9  ;;  %v281_v36 = vrot.slane (!%p163_p2), %v535_v29, %v651_v8  ;;  %v285_v37 = vrot.slane (!%p163_p2), %v535_v29, %v653_v9  ;;  %v566_v29 = vld [vmem:[%s716_s1] sm:$0xff] (!%p163_p2)  }
   0xd   : > { %s721_s16 = smov (!%p188_p3, %s524_s16), 1  ;;  %v303_v45 = vrot.slane %v536_v38, %v651_v8  ;;  %v307_v46 = vrot.slane %v536_v38, %v653_v9  ;;  %vm338_vm6 = vcmp.lt.s32.totalorder %v649_v7, 112  ;;  %v347_v5 = vrot.slane %v538_v60, %v651_v8 }
   0xe   : > { %s545_s17 = sshll.u32 %s721_s16, 4  ;;  %v351_v6 = vrot.slane %v538_v60, %v653_v9  ;;  %vm360_vm7 = vcmp.lt.s32.totalorder %v649_v7, 111  ;;  %vm407_vm9 = vcmask 588800  }
   0xf   : > { %s192_s20 = scalar_lea.vmem %s715_s0, %s545_s17 }
  0x10   : > { %v623_v0 = vld [vmem:[%s192_s20] sm:$0xff]  ;;  %v627_v1 = vld [vmem:[%s192_s20 + $0x8] sm:$0xff] }
  0x11   : > { %224 = vrot.lane.b32.xlu1 %v623_v0, %s575_s21  ;;  %201 = vrot.lane.b32.xlu0 %v623_v0, %s576_s22 }
  0x15   : > { %226 = vrot.lane.b32.xlu1 %v627_v1, %s575_s21  ;;  %203 = vrot.lane.b32.xlu0 %v627_v1, %s576_s22 }
  0x19   : > { %248 = vrot.lane.b32.xlu1 %v627_v1, %s577_s23  ;;  %246 = vrot.lane.b32.xlu0 %v623_v0, %s577_s23 }
  0x1d   : > { %270 = vrot.lane.b32.xlu1 %v627_v1, %s578_s24  ;;  %268 = vrot.lane.b32.xlu0 %v623_v0, %s578_s24 }
  0x21   : > { %292 = vrot.lane.b32.xlu1 %v627_v1, %s579_s25  ;;  %290 = vrot.lane.b32.xlu0 %v623_v0, %s579_s25 }
  0x25   : > { %314 = vrot.lane.b32.xlu1 %v627_v1, %s580_s26  ;;  %312 = vrot.lane.b32.xlu0 %v623_v0, %s580_s26 }
  0x29   : > { %336 = vrot.lane.b32.xlu1 %v627_v1, %s582_s27  ;;  %334 = vrot.lane.b32.xlu0 %v623_v0, %s582_s27  ;;  %s546_s27 = sshll.u32 %s721_s16, 5 }
  0x2a   : > { %s197_s30 = scalar_lea.vmem %s719_s4, %s546_s27 }
  0x2d   : > { %358 = vrot.lane.b32.xlu1 %v627_v1, %s583_s28  ;;  %356 = vrot.lane.b32.xlu0 %v623_v0, %s583_s28 }
  0x31   : > { %394 = vperm.xlu0 %564, %v390_v3   ;;  %399 = vperm.xlu1 %565, %v391_v4   ;;  %v325_v3 = vrot.slane %v537_v59, %v651_v8  ;;  %v329_v4 = vrot.slane %v537_v59, %v653_v9 }
  0x83   : > { %v225_v12 = vpop.permute.xlu1 %224  ;;  %v202_v13 = vpop.permute.xlu0 %201 }
  0x87   : > { %v227_v18 = vpop.permute.xlu1 %226  ;;  %v204_v19 = vpop.permute.xlu0 %203 }
  0x88   : > { %v229_v20 = vsel %vm228_vm0, %v225_v12, %v227_v18  ;;  %v230_v21 = vsel %vm228_vm0, %v227_v18, %v225_v12  ;;  %v208_v22 = vsel %vm207_vm1, %v202_v13, %v204_v19  ;;  %v209_v23 = vsel %vm207_vm1, %v204_v19, %v202_v13 }
  0x89   : > { %v244_v24 = vmul.f32 %v237_v14, %v230_v21  ;;  %v222_v25 = vmul.f32 %v215_v15, %v209_v23  ;;  %v223_v26 = vmul.f32 %v219_v16, %v208_v22  ;;  %v245_v27 = vmul.f32 %v241_v17, %v229_v20 }
  0x8a   : > { %v369_v15 = vrot.slane %v539_v10, %v651_v8  ;;  %v373_v16 = vrot.slane %v539_v10, %v653_v9 }
  0x8b   : > { %v249_v30 = vpop.permute.xlu1 %248  ;;  %v247_v31 = vpop.permute.xlu0 %246  ;;  %v379_v32 = vpack.c.bf16 %v245_v27, %v223_v26  ;;  %v378_v33 = vpack.c.bf16 %v244_v24, %v222_v25 }
  0x8c   : > { %v251_v39 = vsel %vm250_vm2, %v247_v31, %v249_v30  ;;  %v252_v40 = vsel %vm250_vm2, %v249_v30, %v247_v31 }
  0x8d   : > { %418 = vmatprep.subr.bf16.mxu0 %v379_v32  ;;  %v266_v47 = vmul.f32 %v259_v34, %v252_v40  ;;  %v267_v48 = vmul.f32 %v263_v35, %v251_v39 }
  0x8e   : > { %419 = vmatpush1.bf16.msra.mxu0 %v378_v33 }
  0x8f   : > { %v271_v41 = vpop.permute.xlu1 %270  ;;  %v269_v42 = vpop.permute.xlu0 %268 }
  0x90   : > { %v273_v43 = vsel %vm272_vm3, %v269_v42, %v271_v41  ;;  %v274_v44 = vsel %vm272_vm3, %v271_v41, %v269_v42 }
  0x91   : > { %v288_v49 = vmul.f32 %v281_v36, %v274_v44  ;;  %v289_v50 = vmul.f32 %v285_v37, %v273_v43 }
  0x93   : > { %v293_v51 = vpop.permute.xlu1 %292  ;;  %v291_v52 = vpop.permute.xlu0 %290  ;;  %v381_v53 = vpack.c.bf16 %v289_v50, %v267_v48  ;;  %v380_v54 = vpack.c.bf16 %v288_v49, %v266_v47 }
  0x94   : > { %v295_v55 = vsel %vm294_vm4, %v291_v52, %v293_v51  ;;  %v296_v56 = vsel %vm294_vm4, %v293_v51, %v291_v52 }
  0x95   : > { %v310_v57 = vmul.f32 %v303_v45, %v295_v55  ;;  %v311_v58 = vmul.f32 %v307_v46, %v296_v56  ;;  %420 = vmatprep.subr.bf16.mxu0 %v381_v53 }
  0x96   : > { %421 = vmatpush1.bf16.msra.mxu0 %v380_v54 }
  0x97   : > { %v315_v61 = vpop.permute.xlu1 %314  ;;  %v313_v62 = vpop.permute.xlu0 %312  ;;  %v383_v63 = vpack.c.bf16 %v311_v58, %v627_v1  ;;  %v382_v2 = vpack.c.bf16 %v310_v57, %v623_v0 }
  0x98   : > { %v317_v11 = vsel %vm316_vm5, %v313_v62, %v315_v61  ;;  %v318_v12 = vsel %vm316_vm5, %v315_v61, %v313_v62 }
  0x99   : > { %422 = vmatprep.subr.bf16.mxu0 %v383_v63  ;;  %v332_v17 = vmul.f32 %v325_v3, %v317_v11  ;;  %v333_v18 = vmul.f32 %v329_v4, %v318_v12 }
  0x9a   : > { %423 = vmatpush1.bf16.msra.mxu0 %v382_v2 }
  0x9b   : > { %v337_v1 = vpop.permute.xlu1 %336  ;;  %v335_v0 = vpop.permute.xlu0 %334 }
  0x9c   : > { %v339_v13 = vsel %vm338_vm6, %v335_v0, %v337_v1  ;;  %v340_v14 = vsel %vm338_vm6, %v337_v1, %v335_v0 }
  0x9d   : > { %v354_v19 = vmul.f32 %v347_v5, %v339_v13  ;;  %v355_v20 = vmul.f32 %v351_v6, %v340_v14 }
  0x9f   : > { %v359_v21 = vpop.permute.xlu1 %358  ;;  %v357_v22 = vpop.permute.xlu0 %356  ;;  %v385_v23 = vpack.c.bf16 %v355_v20, %v333_v18  ;;  %v384_v24 = vpack.c.bf16 %v354_v19, %v332_v17 }
  0xa0   : > { %v361_v25 = vsel %vm360_vm7, %v357_v22, %v359_v21  ;;  %v362_v26 = vsel %vm360_vm7, %v359_v21, %v357_v22 }
  0xa1   : > { %v376_v27 = vmul.f32 %v369_v15, %v361_v25  ;;  %v377_v28 = vmul.f32 %v373_v16, %v362_v26  ;;  %424 = vmatprep.subr.bf16.mxu0 %v385_v23 }
  0xa2   : > { %425 = vmatpush1.bf16.msra.mxu0 %v384_v24 }
  0xa3   : > { %v386_v7 = vpack.c.bf16 %v376_v27, %v376_v27  ;;  %v387_v8 = vpack.c.bf16 %v377_v28, %v377_v28 }
  0xa5   : > { %541 = vmatprep.subr.msk.bf16.mxu0 %vm411_vm8, %v387_v8  ;;  %v413_v9 = vsel %vm411_vm8, %v386_v7, 0 }
  0xa6   : > { %427 = vmatpush1.bf16.msra.mxu0 %v413_v9 }
  0xa9   : > { %542 = vmatmul.mubr.msk.bf16.vlgmr.msra.gmra.mrb[0].mxu0 %vm407_vm9, %v566_v29 }
  0xb0   : > { %v395_v30 = vpop.permute.xlu0 %394  ;;  %v400_v32 = vpop.permute.xlu1 %399 }
 0x17c   : > { %v452_v31 = vpop.f32.mrb[0].mxu0 }
 0x17d   : > { %v453_v33 = vadd.f32 %v452_v31, %v395_v30  ;;  %v454_v34 = vpop.f32.mrb[1].mxu0 }
 0x17e   : > { %v455_v35 = vadd.f32 %v454_v34, %v395_v30  ;;  %v456_v36 = vpop.f32.mrb[2].mxu0 }
 0x17f   : > { %v461_v37 = vmax.f32 %v453_v33, 0.0  ;;  %v457_v38 = vadd.f32 %v456_v36, %v400_v32  ;;  %v458_v39 = vpop.f32.mrb[3].mxu0 }
 0x180   : > { %v462_v40 = vmax.f32 %v455_v35, 0.0  ;;  %v459_v41 = vadd.f32 %v458_v39, %v400_v32 }
 0x181   : > { %465 = vst [vmem:[%s197_s30] sm:$0xff] %v461_v37  ;;  %v463_v42 = vmax.f32 %v457_v38, 0.0 }
 0x182   : > { %466 = vst [vmem:[%s197_s30 + $0x8] sm:$0xff] %v462_v40  ;;  %v464_v43 = vmax.f32 %v459_v41, 0.0 }
 0x183   : > { %467 = vst [vmem:[%s197_s30 + $0x10] sm:$0xff] %v463_v42 }
 0x184   : > { %468 = vst [vmem:[%s197_s30 + $0x18] sm:$0xff] %v464_v43 }
 0x185 PF: > { %s14_s15 = sadd.s32 1, %s573_s15  }
 0x186   : > { %p11_p4 = scmp.ge.s32.totalorder %s14_s15, 4  }
 0x188   :  { %13 = sbr.rel (!%p11_p4) target bundleno = 1 (0x1), region = 73 }

// kernel: scblock_forward.3
= control target key start
LH: loop header
LB: loop body
LE: loop exit
PB: predicated region body
PF: predicated region fallthrough
CT: control target
= control target key end

     0   :  { %s2965_s24 = smov 0   ;;  %s2967_s25 = smov 0   ;;  %s3837_s0 = inlined_call_operand.vmem [shape: f32[2,16,256], index: 0, kind: input, shape index: {}]   ;;  %s3838_s1 = inlined_call_operand.vmem [shape: bf16[2,16,16], index: 1, kind: input, shape index: {}]   ;;  %s3839_s2 = inlined_call_operand.vmem [shape: f32[2,16,1], index: 2, kind: input, shape index: {}]   ;;  %s3840_s3 = inlined_call_operand.vmem [shape: bf16[2,8,72], index: 3, kind: input, shape index: {}]   ;;  %s3841_s4 = inlined_call_operand.vmem [shape: f32[2,8,1], index: 4, kind: input, shape index: {}]   ;;  %s3842_s5 = inlined_call_operand.vmem [shape: bf16[2,8,72], index: 5, kind: input, shape index: {}]   ;;  %s3843_s6 = inlined_call_operand.vmem [shape: f32[2,8,1], index: 6, kind: input, shape index: {}]   ;;  %s3844_s7 = inlined_call_operand.vmem [shape: bf16[2,8,72], index: 7, kind: input, shape index: {}]   ;;  %s3845_s8 = inlined_call_operand.vmem [shape: f32[2,8,1], index: 8, kind: input, shape index: {}]   ;;  %s3846_s9 = inlined_call_operand.vmem [shape: bf16[2,8,72], index: 9, kind: input, shape index: {}]   ;;  %s3847_s10 = inlined_call_operand.vmem [shape: f32[2,8,1], index: 10, kind: input, shape index: {}]   ;;  %s3848_s11 = inlined_call_operand.vmem [shape: bf16[2,16,144], index: 11, kind: input, shape index: {}]   ;;  %s3849_s12 = inlined_call_operand.vmem [shape: f32[2,16,1], index: 12, kind: input, shape index: {}]   ;;  %s3850_s13 = inlined_call_operand.vmem [shape: bf16[256,16], index: 13, kind: input, shape index: {}]   ;;  %s3851_s14 = inlined_call_operand.vmem [shape: bf16[9,16,16], index: 14, kind: input, shape index: {}]   ;;  %s3852_s15 = inlined_call_operand.vmem [shape: bf16[16,256], index: 15, kind: input, shape index: {}]   ;;  %s3853_s16 = inlined_call_operand.vmem [shape: f32[9,1,256], index: 16, kind: input, shape index: {}]   ;;  %s3854_s17 = inlined_call_operand.vmem [shape: f32[2,16,256], index: 17, kind: output, shape index: {}]  }
   0x1   :  { %3868 = sst [smem:[#allocation10_spill]] %s3837_s0  ;;  %s2969_s26 = smov 0  }
   0x2   :  { %3869 = sst [smem:[#allocation11_spill]] %s3838_s1  ;;  %s2971_s27 = smov 0  }
   0x3   :  { %3870 = sst [smem:[#allocation12_spill]] %s3839_s2  ;;  %s2973_s28 = smov 0  }
   0x4   :  { %3871 = sst [smem:[#allocation13_spill]] %s3840_s3 }
   0x5   :  { %3872 = sst [smem:[#allocation14_spill]] %s3850_s13 }
   0x6   :  { %3873 = sst [smem:[#allocation15_spill]] %s3851_s14 }
   0x7   :  { %3874 = sst [smem:[#allocation16_spill]] %s3852_s15 }
   0x8   :  { %3875 = sst [smem:[#allocation17_spill]] %s3853_s16 }
   0x9   :  { %3876 = sst [smem:[#allocation18_spill]] %s3854_s17 }
   0xa LB: > { %3877 = sst [smem:[#allocation3_spill]] %s2846_s24  ;;  %s36_s29 = sadd.s32 1, %s2854_s26  ;;  %s2862_s28 = sphi %s2973_s28, %s27_s28   ;;  %s2858_s27 = sphi %s2971_s27, %s3912_s27   ;;  %s2854_s26 = sphi %s2969_s26, %s3911_s26   ;;  %s2850_s25 = sphi %s2967_s25, %s3910_s25   ;;  %s2846_s24 = sphi %s2965_s24, %s3909_s24  }
   0xb   : > { %3878 = sst [smem:[#allocation4_spill]] %s2854_s26  ;;  %s39_s0 = sadd.s32 1, %s2858_s27 }
   0xc   : > { %3879 = sst [smem:[#allocation5_spill]] %s2858_s27  ;;  %p37_p0 = scmp.ge.s32.totalorder %s36_s29, 2 }
   0xd   : > { %3880 = sst [smem:[#allocation6_spill]] %s2862_s28  ;;  %p2521_p1 = scmp.ge.s32.totalorder %s2862_s28, 1 }
   0xe   : > { %p611_p2 = scmp.lt.s32.totalorder %s2862_s28, 5  ;;  %s3914_s29 = smov (%p37_p0, %s36_s29), 0 }
   0xf   : > { %3881 = sst [smem:[#allocation7_spill]] %s3914_s29  ;;  %s3916_s0 = smov (!%p37_p0, %s39_s0), %s2858_s27 }
  0x10   : > { %p612_p3 = pnand %p2521_p1, %p611_p2  ;;  %p41_p4 = scmp.ge.s32.totalorder %s3916_s0, 2 }
  0x12   : > { %s3918_s0 = smov (%p41_p4, %s3916_s0), 0  ;;  %615 = sbr.rel (%p612_p3) target bundleno = 1969 (0x7b1), region = 88 }
  0x13   : > { %3882 = sst [smem:[#allocation8_spill]] %s3918_s0 }
  0x19   : > { %p715_p5 = scmp.lt.s32.totalorder %s2850_s25, 1  ;;  %p720_p6 = scmp.lt.s32.totalorder %s2846_s24, 1 }
  0x1a   : > { %s3883_s20 = sld [smem:[#allocation10_spill]]  ;;  %s3885_s2 = sld [smem:[#allocation12_spill]] }
  0x1b   : > { %s3920_s25 = smov (!%p715_p5, %s2850_s25), 1  ;;  %s3888_s19 = sld [smem:[#allocation18_spill]] }
  0x1c   : > { %s721_s30 = scalar_select %p720_p6, %s2846_s24, 1 }
  0x1d   : > { %s2616_s18 = sshll.u32 %s3920_s25, 5  ;;  %s3889_s3 = sld [smem:[#allocation3_spill]] }
  0x1e   : > { %s3002_s22 = sshll.u32 %s721_s30, 3  ;;  %s2618_s26 = sshll.u32 %s721_s30, 4 }
  0x1f   : > { %s3013_s16 = sshll.u32 %s721_s30, 2  ;;  %s745_s30 = scalar_lea.vmem %s3843_s6, %s3002_s22 }
  0x20   : > { %s719_s21 = scalar_lea.vmem %s3883_s20, %s2616_s18  ;;  %s3011_s25 = scalar_lea.vmem %s3885_s2, %s2618_s26 }
  0x21   : > { %3886 = sst [smem:[#allocation9_spill]] %s3011_s25  ;;  %s3050_s2 = scalar_lea.vmem %s3848_s11, %s2618_s26 }
  0x22   : > { %s3055_s25 = scalar_lea.vmem %s3849_s12, %s2618_s26  ;;  %s3060_s29 = scalar_lea.vmem %s3888_s19, %s2616_s18 }
  0x23   : > { %p2542_p7 = scmp.ne.s32.totalorder %s3889_s3, 0 }
  0x24   : > { %v782_v0 = vld [vmem:[%s719_s21] sm:$0xff] (!%p2542_p7)  ;;  %v783_v1 = vld [vmem:[%s719_s21 + $0x8] sm:$0xff] (!%p2542_p7)  ;;  %v784_v2 = vld [vmem:[%s719_s21 + $0x10] sm:$0xff] (!%p2542_p7) }
  0x25   : > { %781 = sbr.rel (%p2542_p7) target bundleno = 44 (0x2c), region = 92  ;;  %786 = vst [vmem:[#allocation2] sm:$0xff] (!%p2542_p7), %v782_v0  ;;  %787 = vst [vmem:[#allocation2 + $0x8] sm:$0xff] (!%p2542_p7), %v783_v1  ;;  %v785_v3 = vld [vmem:[%s719_s21 + $0x18] sm:$0xff] (!%p2542_p7) }
  0x26   : > { %788 = vst [vmem:[#allocation2 + $0x10] sm:$0xff] (!%p2542_p7), %v784_v2  ;;  %789 = vst [vmem:[#allocation2 + $0x18] sm:$0xff] (!%p2542_p7), %v785_v3 }
  0x2c PF: > { %v791_v4 = vld [vmem:[#allocation2 + $0x8] sm:$0xff]  ;;  %s3890_s17 = sld [smem:[#allocation9_spill]]  ;;  %v790_v6 = vld [vmem:[#allocation2] sm:$0xff]  ;;  %v2864_v9 = vmov 0   ;;  %s3891_s27 = sld [smem:[#allocation11_spill]]  ;;  %vm815_vm0 = vcmask 130048   ;;  %v871_v49 = vlaneseq }
  0x2d   : > { %v793_v5 = vld [vmem:[#allocation2 + $0x18] sm:$0xff]  ;;  %v792_v8 = vld [vmem:[#allocation2 + $0x10] sm:$0xff]  ;;  %851 = vmatprep.mubr.bf16.mxu0 %v2864_v9  ;;  %2779 = vset.pattern.permute.xlu0 %v2864_v9  ;;  %s3893_s23 = sld [smem:[#allocation14_spill]]  ;;  %s2865_s1 = smov 16   ;;  %v1685_v46 = vld [vmem:[%s745_s30] sm:$0xff]  ;;  %v2873_v48 = vmov 0.0  }
  0x2e   : > { %v797_v7 = vpack.c.bf16 %v793_v5, %v791_v4  ;;  %v796_v10 = vpack.c.bf16 %v792_v8, %v790_v6  ;;  %1103 = vmatprep.mubr.bf16.mxu1 %v2864_v9  ;;  %2780 = vset.pattern.permute.xlu1 %v2864_v9  ;;  %s2866_s3 = smov 17   ;;  %s2868_s26 = smov 1   ;;  %vm2874_vm1 = vmmov 0   ;;  %v879_v50 = vshrl.u32 %v871_v49, 7 }
  0x2f   : > { %s2869_s18 = smov 127   ;;  %s3864_s15 = smov 111   ;;  %v3211_v53 = vand.u32 127, %v871_v49  ;;  %vm1064_vm10 = vcmask 1043456   ;;  %vm1060_vm11 = vcmask 588800  }
  0x30   : > { %819 = vmatprep.subr.bf16.mxu0 %v797_v7  ;;  %s3894_s13 = sld [smem:[#allocation15_spill]]  ;;  %v3213_v54 = vsub.s32 0, %v879_v50  ;;  %s3895_s0 = sld [smem:[#allocation17_spill]]  ;;  %v3218_v56 = vsub.s32 1, %v879_v50 }
  0x31   : > { %820 = vmatpush1.bf16.msra.mxu0 %v796_v10  ;;  %vm873_vm2 = vcmp.lt.s32.totalorder %v3211_v53, 17  ;;  %vm894_vm3 = vcmp.lt.s32.totalorder %v3211_v53, 16  ;;  %vm916_vm4 = vcmp.lt.s32.totalorder %v3211_v53, 15  ;;  %vm938_vm5 = vcmp.lt.s32.totalorder %v3211_v53, 1  ;;  %s3896_s30 = sld [smem:[#allocation13_spill]]  ;;  %s3899_s20 = scalar_lea.vmem %s3842_s5, %s3013_s16 }
  0x32   : > { %s3892_s21 = scalar_lea.vmem %s3891_s27, %s3002_s22  ;;  %v799_v12 = vld [vmem:[%s3890_s17 + $0x8] sm:$0xff]  ;;  %v798_v13 = vld [vmem:[%s3890_s17] sm:$0xff]  ;;  %s2867_s17 = smov 15   ;;  %vm960_vm6 = vcmp.lt.s32.totalorder %v3211_v53, 127  ;;  %vm982_vm7 = vcmp.lt.s32.totalorder %v3211_v53, 113  ;;  %vm1004_vm8 = vcmp.lt.s32.totalorder %v3211_v53, 112 }
  0x33   : > { %v2781_v11 = vld [vmem:[%s3892_s21] sm:$0xff]   ;;  %807 = vperm.xlu0 %2779, %v799_v12   ;;  %v2784_v16 = vld [vmem:[%s3893_s23 + $0x48] sm:$0xff]   ;;  %v2786_v18 = vld [vmem:[%s3893_s23 + $0x50] sm:$0xff]   ;;  %s3866_s27 = smov 113   ;;  %s2871_s21 = smov 112   ;;  %vm1026_vm9 = vcmp.lt.s32.totalorder %v3211_v53, 111 }
  0x34   : > { %v2782_v14 = vld [vmem:[%s3893_s23 + $0x40] sm:$0xff]   ;;  %2544 = vmatmul.mubr.msk.bf16.vlgmr.msra.gmra.mrb[0].mxu0 %vm815_vm0, %v2781_v11  ;;  %v2785_v17 = vld [vmem:[%s3893_s23 + $0x8] sm:$0xff]   ;;  %v2787_v19 = vld [vmem:[%s3893_s23 + $0x10] sm:$0xff]   ;;  %s3900_s19 = scalar_lea.vmem %s3845_s8, %s3002_s22  ;;  %s3902_s14 = smov 111  }
  0x35   : > { %v2783_v15 = vld [vmem:[%s3893_s23] sm:$0xff]   ;;  %2622 = vmatprep.subr.bf16.mxu0 %v2782_v14  ;;  %v2788_v20 = vld [vmem:[%s3893_s23 + $0x58] sm:$0xff]   ;;  %v2792_v24 = vld [vmem:[%s3893_s23 + $0x68] sm:$0xff]   ;;  %s3905_s24 = scalar_lea.vmem %s3846_s9, %s3013_s16 }
  0x36   : > { %2623 = vmatpush3.bf16.msra.mxu0 %v2783_v15  ;;  %v2789_v21 = vld [vmem:[%s3893_s23 + $0x18] sm:$0xff]   ;;  %v2790_v22 = vld [vmem:[%s3893_s23 + $0x60] sm:$0xff]   ;;  %v2793_v25 = vld [vmem:[%s3893_s23 + $0x28] sm:$0xff]  }
  0x37   : > { %802 = vperm.xlu0 %2779, %v798_v13   ;;  %2624 = vmatprep.subr.bf16.mxu0 %v2784_v16  ;;  %v2791_v23 = vld [vmem:[%s3893_s23 + $0x20] sm:$0xff]   ;;  %v2794_v26 = vld [vmem:[%s3893_s23 + $0x70] sm:$0xff]   ;;  %v2796_v28 = vld [vmem:[%s3893_s23 + $0x78] sm:$0xff]   ;;  %s3897_s28 = scalar_lea.vmem %s3896_s30, %s3013_s16  ;;  %s3903_s30 = scalar_lea.vmem %s3841_s4, %s3002_s22 }
  0x38   : > { %v2795_v27 = vld [vmem:[%s3893_s23 + $0x30] sm:$0xff]   ;;  %v2797_v29 = vld [vmem:[%s3893_s23 + $0x38] sm:$0xff]   ;;  %v2798_v47 = vld [vmem:[%s3894_s13] sm:$0xff]  }
  0x39   : > { %v876_v55 = vld [vmem:[%s3895_s0] sm:$0x3]  ;;  %v2545_v57 = vld [vmem:[%s3895_s0 + $0x2] sm:$0x3]  ;;  %v2546_v8 = vld [vmem:[%s3895_s0 + $0x4] sm:$0x3] }
  0x3a   : > { %2625 = vmatpush3.bf16.msra.mxu0 %v2785_v17  ;;  %v3225_v60 = vrot.slane %v876_v55, %v3213_v54  ;;  %v3229_v61 = vrot.slane %v2545_v57, %v3213_v54  ;;  %v3232_v62 = vrot.slane %v876_v55, %v3218_v56  ;;  %v3235_v63 = vrot.slane %v2545_v57, %v3218_v56  ;;  %v2547_v12 = vld [vmem:[%s3895_s0 + $0x6] sm:$0x3] }
  0x3b   : > { %2626 = vmatprep.subr.bf16.mxu0 %v2786_v18  ;;  %v3257_v16 = vrot.slane %v2546_v8, %v3213_v54  ;;  %v3260_v18 = vrot.slane %v2546_v8, %v3218_v56 }
  0x3e   : > { %2627 = vmatpush3.bf16.msra.mxu0 %v2787_v19  ;;  %v3264_v19 = vrot.slane %v2547_v12, %v3213_v54 }
  0x3f   : > { %2628 = vmatprep.subr.bf16.mxu0 %v2788_v20  ;;  %v3267_v20 = vrot.slane %v2547_v12, %v3218_v56 }
  0x42   : > { %2629 = vmatpush3.bf16.msra.mxu0 %v2789_v21  ;;  %v2548_v21 = vld [vmem:[%s3895_s0 + $0xa] sm:$0x3] }
  0x43   : > { %2630 = vmatprep.subr.bf16.mxu0 %v2790_v22 }
  0x46   : > { %2631 = vmatpush3.bf16.msra.mxu0 %v2791_v23 }
  0x47   : > { %2632 = vmatprep.subr.bf16.mxu0 %v2792_v24 }
  0x4a   : > { %2633 = vmatpush3.bf16.msra.mxu0 %v2793_v25 }
  0x4b   : > { %2634 = vmatprep.subr.bf16.mxu0 %v2794_v26 }
  0x4e   : > { %2635 = vmatpush3.bf16.msra.mxu0 %v2795_v27  ;;  %v3282_v27 = vrot.slane %v2548_v21, %v3213_v54 }
  0x4f   : > { %2636 = vmatprep.subr.bf16.mxu0 %v2796_v28  ;;  %v3285_v28 = vrot.slane %v2548_v21, %v3218_v56 }
  0x52   : > { %2637 = vmatpush3.bf16.msra.mxu0 %v2797_v29 }
  0x53   : > { %2666 = vmatprep.subr.bf16.mxu0 %v2873_v48 }
  0xb2   : > { %v808_v30 = vpop.permute.xlu0 %807 }
  0xb6   : > { %v803_v31 = vpop.permute.xlu0 %802 }
 0x107   : > { %v853_v32 = vpop.f32.mrb[0].mxu0 }
 0x108   : > { %v854_v33 = vadd.f32 %v853_v32, %v803_v31  ;;  %v855_v34 = vpop.f32.mrb[1].mxu0 }
 0x109   : > { %v857_v35 = vpop.f32.mrb[2].mxu0  ;;  %v856_v37 = vadd.f32 %v855_v34, %v803_v31 }
 0x10a   : > { %v3123_v36 = vmax.f32 %v854_v33, 0.0  ;;  %v858_v38 = vadd.f32 %v857_v35, %v808_v30  ;;  %v859_v39 = vpop.f32.mrb[3].mxu0 }
 0x10b   : > { %v860_v40 = vadd.f32 %v859_v39, %v808_v30  ;;  %v3133_v43 = vmax.f32 %v856_v37, 0.0 }
 0x10c   : > { %v3125_v41 = vmax.f32 %v858_v38, 0.0  ;;  %890 = vrot.lane.b32.xlu0 %v3123_v36, %s2865_s1  ;;  %867 = vrot.lane.b32.xlu1 %v3123_v36, %s2866_s3 }
 0x10d   : > { %v3131_v42 = vmax.f32 %v860_v40, 0.0 }
 0x10e   : > { %v1114_v45 = vpack.c.bf16 %v3125_v41, %v3125_v41 }
 0x10f   : > { %v1115_v44 = vpack.c.bf16 %v3131_v42, %v3131_v42 }
 0x110   : > { %912 = vrot.lane.b32.xlu0 %v3123_v36, %s2867_s17  ;;  %869 = vrot.lane.b32.xlu1 %v3133_v43, %s2866_s3 }
 0x111   : > { %1276 = vmatprep.mubr.bf16.mxu0 %v1115_v44 }
 0x112   : > { %1277 = vmatmul.mubr.bf16.vlgmr.msra.gmra.mrb[4].mxu0 %v1114_v45  ;;  %v2549_v45 = vld [vmem:[%s3895_s0 + $0xc] sm:$0x3] }
 0x113   : > { %2667 = vmatpush3.bf16.msra.mxu0 %v2798_v47  ;;  %2668 = vmatprep.mubr.msk.bf16.mxu0 %vm2874_vm1, %v2873_v48  ;;  %v3310_v55 = vrot.slane %v2549_v45, %v3218_v56 }
 0x114   : > { %934 = vrot.lane.b32.xlu0 %v3123_v36, %s2868_s26  ;;  %892 = vrot.lane.b32.xlu1 %v3133_v43, %s2865_s1 }
 0x115   : > { %2678 = vmatprep.subr.bf16.mxu0 %v2873_v48 }
 0x118   : > { %956 = vrot.lane.b32.xlu0 %v3123_v36, %s2869_s18  ;;  %914 = vrot.lane.b32.xlu1 %v3133_v43, %s2867_s17 }
 0x11c   : > { %978 = vrot.lane.b32.xlu0 %v3123_v36, %s3866_s27  ;;  %936 = vrot.lane.b32.xlu1 %v3133_v43, %s2868_s26 }
 0x120   : > { %1000 = vrot.lane.b32.xlu0 %v3123_v36, %s2871_s21  ;;  %958 = vrot.lane.b32.xlu1 %v3133_v43, %s2869_s18 }
 0x124   : > { %1022 = vrot.lane.b32.xlu0 %v3123_v36, %s3864_s15  ;;  %980 = vrot.lane.b32.xlu1 %v3133_v43, %s3866_s27 }
 0x128   : > { %1688 = vperm.xlu0 %2779, %v1685_v46   ;;  %1002 = vrot.lane.b32.xlu1 %v3133_v43, %s2871_s21  ;;  %v2550_v46 = vld [vmem:[%s3895_s0 + $0xe] sm:$0x3] }
 0x129   : > { %v3314_v57 = vrot.slane %v2550_v46, %v3213_v54 }
 0x12c   : > { %1809 = vrot.lane.b32.xlu0 %v3131_v42, %s2866_s3  ;;  %1024 = vrot.lane.b32.xlu1 %v3133_v43, %s3864_s15 }
 0x130   : > { %1817 = vrot.lane.b32.xlu0 %v3131_v42, %s2865_s1  ;;  %1807 = vrot.lane.b32.xlu1 %v3125_v41, %s2866_s3 }
 0x134   : > { %1825 = vrot.lane.b32.xlu0 %v3131_v42, %s2867_s17  ;;  %1815 = vrot.lane.b32.xlu1 %v3125_v41, %s2865_s1 }
 0x138   : > { %1833 = vrot.lane.b32.xlu0 %v3131_v42, %s2868_s26  ;;  %1823 = vrot.lane.b32.xlu1 %v3125_v41, %s2867_s17 }
 0x13c   : > { %1841 = vrot.lane.b32.xlu0 %v3131_v42, %s2869_s18  ;;  %1831 = vrot.lane.b32.xlu1 %v3125_v41, %s2868_s26 }
 0x140   : > { %1849 = vrot.lane.b32.xlu0 %v3131_v42, %s3866_s27  ;;  %1839 = vrot.lane.b32.xlu1 %v3125_v41, %s2869_s18 }
 0x144   : > { %1857 = vrot.lane.b32.xlu0 %v3131_v42, %s2871_s21  ;;  %1847 = vrot.lane.b32.xlu1 %v3125_v41, %s3866_s27 }
 0x148   : > { %1865 = vrot.lane.b32.xlu0 %v3131_v42, %s3864_s15  ;;  %1855 = vrot.lane.b32.xlu1 %v3125_v41, %s2871_s21 }
 0x14c   : > { %1863 = vrot.lane.b32.xlu1 %v3125_v41, %s3864_s15  ;;  %s3898_s15 = sld [smem:[#allocation16_spill]] }
 0x17e   : > { %v891_v51 = vpop.permute.xlu0 %890  ;;  %v868_v52 = vpop.permute.xlu1 %867 }
 0x182   : > { %v913_v58 = vpop.permute.xlu0 %912  ;;  %v870_v59 = vpop.permute.xlu1 %869 }
 0x183   : > { %v874_v0 = vsel %vm873_vm2, %v868_v52, %v870_v59  ;;  %v875_v1 = vsel %vm873_vm2, %v870_v59, %v868_v52 }
 0x184   : > { %v888_v6 = vmul.f32 %v3225_v60, %v875_v1  ;;  %v889_v10 = vmul.f32 %v3232_v62, %v874_v0 }
 0x186   : > { %v935_v2 = vpop.permute.xlu0 %934  ;;  %v893_v3 = vpop.permute.xlu1 %892 }
 0x187   : > { %v895_v4 = vsel %vm894_vm3, %v891_v51, %v893_v3  ;;  %v896_v5 = vsel %vm894_vm3, %v893_v3, %v891_v51  ;;  %v3307_v51 = vrot.slane %v2549_v45, %v3213_v54 }
 0x188   : > { %v910_v7 = vmul.f32 %v3229_v61, %v896_v5  ;;  %v911_v11 = vmul.f32 %v3235_v63, %v895_v4 }
 0x18a   : > { %v915_v13 = vpop.permute.xlu1 %914  ;;  %v1045_v14 = vpack.c.bf16 %v911_v11, %v889_v10  ;;  %v1044_v15 = vpack.c.bf16 %v910_v7, %v888_v6  ;;  %v957_v17 = vpop.permute.xlu0 %956 }
 0x18b   : > { %v917_v22 = vsel %vm916_vm4, %v913_v58, %v915_v13  ;;  %v918_v23 = vsel %vm916_vm4, %v915_v13, %v913_v58  ;;  %v3317_v58 = vrot.slane %v2550_v46, %v3218_v56  ;;  %v2800_v46 = vld [vmem:[%s3894_s13 + $0x10] sm:$0xff]  }
 0x18c   : > { %1071 = vmatprep.subr.bf16.mxu1 %v1045_v14  ;;  %v932_v29 = vmul.f32 %v3257_v16, %v918_v23  ;;  %v933_v30 = vmul.f32 %v3260_v18, %v917_v22  ;;  %v866_v23 = vld [vmem:[%s3897_s28] sm:$0xf] }
 0x18d   : > { %1072 = vmatpush1.bf16.msra.mxu1 %v1044_v15 }
 0x18e   : > { %v937_v24 = vpop.permute.xlu1 %936  ;;  %v979_v33 = vpop.permute.xlu0 %978 }
 0x18f   : > { %v939_v25 = vsel %vm938_vm5, %v935_v2, %v937_v24  ;;  %v940_v26 = vsel %vm938_vm5, %v937_v24, %v935_v2  ;;  %v2799_v24 = vld [vmem:[%s3894_s13 + $0x8] sm:$0xff]  }
 0x190   : > { %v954_v31 = vmul.f32 %v3264_v19, %v940_v26  ;;  %v955_v32 = vmul.f32 %v3267_v20, %v939_v25 }
 0x192   : > { %v959_v34 = vpop.permute.xlu1 %958  ;;  %v1047_v35 = vpack.c.bf16 %v955_v32, %v933_v30  ;;  %v1046_v37 = vpack.c.bf16 %v954_v31, %v932_v29  ;;  %v1001_v52 = vpop.permute.xlu0 %1000 }
 0x193   : > { %v961_v38 = vsel %vm960_vm6, %v957_v17, %v959_v34  ;;  %v962_v39 = vsel %vm960_vm6, %v959_v34, %v957_v17 }
 0x194   : > { %v976_v40 = vmul.f32 %v3282_v27, %v961_v38  ;;  %v977_v44 = vmul.f32 %v3285_v28, %v962_v39  ;;  %1073 = vmatprep.subr.bf16.mxu1 %v1047_v35 }
 0x195   : > { %1074 = vmatpush1.bf16.msra.mxu1 %v1046_v37 }
 0x196   : > { %v981_v47 = vpop.permute.xlu1 %980  ;;  %v1049_v49 = vpack.c.bf16 %v977_v44, %v3133_v43  ;;  %v1048_v50 = vpack.c.bf16 %v976_v40, %v3123_v36  ;;  %v2551_v36 = vld [vmem:[%s3895_s0 + $0x10] sm:$0x3]  ;;  %v1023_v10 = vpop.permute.xlu0 %1022 }
 0x197   : > { %v983_v43 = vsel %vm982_vm7, %v979_v33, %v981_v47  ;;  %v984_v59 = vsel %vm982_vm7, %v981_v47, %v979_v33  ;;  %v3332_v3 = vrot.slane %v2551_v36, %v3213_v54  ;;  %v3335_v4 = vrot.slane %v2551_v36, %v3218_v56  ;;  %v2801_v47 = vld [vmem:[%s3894_s13 + $0x18] sm:$0xff]  }
 0x198   : > { %1075 = vmatprep.subr.bf16.mxu1 %v1049_v49  ;;  %v998_v5 = vmul.f32 %v3307_v51, %v983_v43  ;;  %v999_v6 = vmul.f32 %v3310_v55, %v984_v59  ;;  %v2804_v36 = vld [vmem:[%s3894_s13 + $0x38] sm:$0xff]   ;;  %v2805_v43 = vld [vmem:[%s3894_s13 + $0x40] sm:$0xff]  }
 0x199   : > { %1076 = vmatpush1.bf16.msra.mxu1 %v1048_v50  ;;  %v2802_v50 = vld [vmem:[%s3894_s13 + $0x28] sm:$0xff]  }
 0x19a   : > { %v1003_v0 = vpop.permute.xlu1 %1002  ;;  %v2808_v59 = vld [vmem:[%s3898_s15 + $0x4] ss:$8 sps:$4 sm:$0xff]  }
 0x19b   : > { %v1005_v1 = vsel %vm1004_vm8, %v1001_v52, %v1003_v0  ;;  %v1006_v2 = vsel %vm1004_vm8, %v1003_v0, %v1001_v52  ;;  %v2803_v52 = vld [vmem:[%s3894_s13 + $0x30] sm:$0xff]  }
 0x19c   : > { %v1020_v7 = vmul.f32 %v3314_v57, %v1005_v1  ;;  %v1021_v8 = vmul.f32 %v3317_v58, %v1006_v2 }
 0x19e   : > { %v1025_v11 = vpop.permute.xlu1 %1024  ;;  %v1051_v12 = vpack.c.bf16 %v1021_v8, %v999_v6  ;;  %v1050_v13 = vpack.c.bf16 %v1020_v7, %v998_v5  ;;  %v2806_v5 = vld [vmem:[%s3898_s15] ss:$8 sps:$4 sm:$0xff]  }
 0x19f   : > { %v1027_v54 = vsel %vm1026_vm9, %v1023_v10, %v1025_v11  ;;  %v1028_v56 = vsel %vm1026_vm9, %v1025_v11, %v1023_v10 }
 0x1a0   : > { %v1042_v14 = vmul.f32 %v3332_v3, %v1027_v54  ;;  %v1043_v15 = vmul.f32 %v3335_v4, %v1028_v56  ;;  %1077 = vmatprep.subr.bf16.mxu1 %v1051_v12 }
 0x1a1   : > { %1078 = vmatpush1.bf16.msra.mxu1 %v1050_v13 }
 0x1a2   : > { %v1052_v17 = vpack.c.bf16 %v1042_v14, %v1042_v14  ;;  %v1053_v21 = vpack.c.bf16 %v1043_v15, %v1043_v15  ;;  %v1808_v26 = vpop.permute.xlu1 %1807 }
 0x1a4   : > { %2552 = vmatprep.subr.msk.bf16.mxu1 %vm1064_vm10, %v1053_v21  ;;  %v1066_v22 = vsel %vm1064_vm10, %v1052_v17, 0 }
 0x1a5   : > { %1080 = vmatpush1.bf16.msra.mxu1 %v1066_v22 }
 0x1a6   : > { %2672 = vmatprep.subr.bf16.mxu1 %v2873_v48  ;;  %v1816_v31 = vpop.permute.xlu1 %1815 }
 0x1a7   : > { %v3358_v25 = vpop.permute.xlu0 %1688 }
 0x1a8   : > { %2553 = vmatmul.mubr.msk.bf16.vlgmr.msra.gmra.mrb[0].mxu1 %vm1060_vm11, %v866_v23 }
 0x1a9   : > { %2673 = vmatpush3.bf16.msra.mxu1 %v2799_v24  ;;  %2674 = vmatprep.mubr.msk.bf16.mxu1 %vm2874_vm1, %v2873_v48 }
 0x1aa   : > { %2684 = vmatprep.subr.bf16.mxu1 %v2873_v48 }
 0x1ab   : > { %v1810_v29 = vpop.permute.xlu0 %1809 }
 0x1ac   : > { %v1812_v30 = vsel %vm873_vm2, %v1810_v29, %v1808_v26  ;;  %v1811_v1 = vsel %vm873_vm2, %v1808_v26, %v1810_v29 }
 0x1ad   : > { %v3369_v34 = vmul.f32 %v1812_v30, %v3225_v60  ;;  %v1814_v6 = vmul.f32 %v1811_v1, %v3232_v62 }
 0x1af   : > { %v1818_v32 = vpop.permute.xlu0 %1817 }
 0x1b0   : > { %v1820_v33 = vsel %vm894_vm3, %v1818_v32, %v1816_v31  ;;  %v1819_v0 = vsel %vm894_vm3, %v1816_v31, %v1818_v32 }
 0x1b1   : > { %v3372_v35 = vmul.f32 %v1820_v33, %v3229_v61  ;;  %v1822_v2 = vmul.f32 %v1819_v0, %v3235_v63 }
 0x1b3   : > { %v1871_v37 = vpack.c.bf16 %v3372_v35, %v3369_v34  ;;  %v1872_v7 = vpack.c.bf16 %v1822_v2, %v1814_v6 }
 0x1e5   : > { %v2638_v38 = vpop.f32.mrb[4].mxu0 }
 0x1e6   : > { %v2639_v39 = vpop.f32.mrb[5].mxu0 }
 0x1e7   : > { %v3376_v40 = vadd.f32 %v2639_v39, %v2638_v38  ;;  %v2641_v44 = vpop.f32.mrb[6].mxu0 }
 0x1e8   : > { %v2642_v45 = vpop.f32.mrb[7].mxu0 }
 0x1e9   : > { %v1284_v49 = vpack.c.bf16 %v3376_v40, %v3376_v40 }
 0x1eb   : > { %2669 = vmatmul.mubr.msk.bf16.vlgmr.msra.gmra.mrb[8].mxu0 %vm815_vm0, %v1284_v49  ;;  %2675 = vmatmul.mubr.msk.bf16.vlgmr.msra.gmra.mrb[4].mxu1 %vm815_vm0, %v1284_v49 }
 0x1ec   : > { %2679 = vmatpush3.bf16.msra.mxu0 %v2800_v46  ;;  %2685 = vmatpush3.bf16.msra.mxu1 %v2801_v47 }
 0x1ed   : > { %2680 = vmatprep.mubr.msk.bf16.mxu0 %vm2874_vm1, %v2873_v48  ;;  %2686 = vmatprep.mubr.msk.bf16.mxu1 %vm2874_vm1, %v2873_v48 }
 0x1ee   : > { %2690 = vmatprep.subr.bf16.mxu0 %v2873_v48  ;;  %2696 = vmatprep.subr.bf16.mxu1 %v2873_v48 }
 0x1f3   : > { %2681 = vmatmul.mubr.msk.bf16.vlgmr.msra.gmra.mrb[12].mxu0 %vm815_vm0, %v1284_v49  ;;  %2687 = vmatmul.mubr.msk.bf16.vlgmr.msra.gmra.mrb[8].mxu1 %vm815_vm0, %v1284_v49 }
 0x1f4   : > { %2691 = vmatpush3.bf16.msra.mxu0 %v2802_v50  ;;  %2697 = vmatpush3.bf16.msra.mxu1 %v2803_v52 }
 0x1f5   : > { %2692 = vmatprep.mubr.msk.bf16.mxu0 %vm2874_vm1, %v2873_v48  ;;  %2698 = vmatprep.mubr.msk.bf16.mxu1 %vm2874_vm1, %v2873_v48 }
 0x1f6   : > { %2702 = vmatprep.subr.bf16.mxu0 %v2873_v48  ;;  %2708 = vmatprep.subr.bf16.mxu1 %v2873_v48 }
 0x1fb   : > { %2693 = vmatmul.mubr.msk.bf16.vlgmr.msra.gmra.mrb[16].mxu0 %vm815_vm0, %v1284_v49  ;;  %2699 = vmatmul.mubr.msk.bf16.vlgmr.msra.gmra.mrb[12].mxu1 %vm815_vm0, %v1284_v49 }
 0x1fc   : > { %2703 = vmatpush3.bf16.msra.mxu0 %v2804_v36  ;;  %2709 = vmatpush3.bf16.msra.mxu1 %v2805_v43 }
 0x1fd   : > { %2704 = vmatprep.mubr.msk.bf16.mxu0 %vm2874_vm1, %v2873_v48  ;;  %2710 = vmatprep.mubr.msk.bf16.mxu1 %vm2874_vm1, %v2873_v48 }
 0x1fe   : > { %1753 = vmatprep.subr.bf16.mxu1 %v2808_v59  ;;  %2714 = vmatprep.subr.bf16.mxu0 %v2873_v48 }
 0x203   : > { %2705 = vmatmul.mubr.msk.bf16.vlgmr.msra.gmra.mrb[20].mxu0 %vm815_vm0, %v1284_v49  ;;  %2711 = vmatmul.mubr.msk.bf16.vlgmr.msra.gmra.mrb[16].mxu1 %vm815_vm0, %v1284_v49 }
 0x204   : > { %1754 = vmatpush1.bf16.msra.mxu1 %v2806_v5  ;;  %2724 = vmatprep.mubr.msk.bf16.mxu0 %vm2874_vm1, %v2873_v48 }
 0x205   : > { %1896 = vmatprep.subr.bf16.mxu1 %v1872_v7  ;;  %1785 = vmatprep.mubr.bf16.mxu1 %v2864_v9 }
 0x27b   : > { %v3438_v8 = vpop.f32.mrb[0].mxu1 }
 0x27c   : > { %v3440_v10 = vpop.f32.mrb[1].mxu1 }
 0x27d   : > { %v1109_v11 = vpop.f32.mrb[2].mxu1 }
 0x27e   : > { %v1110_v12 = vpop.f32.mrb[3].mxu1 }
 0x2be   : > { %v1330_v13 = vpop.f32.mrb[8].mxu0  ;;  %v1379_v54 = vpop.f32.mrb[4].mxu1 }
 0x2bf   : > { %v1679_v56 = vpack.c.bf16 %v1379_v54, %v1330_v13  ;;  %v2670_v14 = vpop.f32.mrb[9].mxu0  ;;  %v2676_v15 = vpop.f32.mrb[5].mxu1  ;;  %v1684_v54 = vld [vmem:[%s3899_s20] sm:$0xf]  ;;  %s3901_s20 = scalar_lea.vmem %s3844_s7, %s3013_s16  ;;  %s3906_s16 = smov 113  }
 0x2c0   : > { %v1333_v17 = vpop.f32.mrb[10].mxu0  ;;  %v1382_v21 = vpop.f32.mrb[6].mxu1 }
 0x2c1   : > { %v2671_v22 = vpop.f32.mrb[11].mxu0  ;;  %v2677_v23 = vpop.f32.mrb[7].mxu1  ;;  %2715 = vmatpush3.bf16.msra.mxu0 %v1679_v56  ;;  %v1881_v56 = vld [vmem:[%s3900_s19] sm:$0xff] }
 0x2c2   : > { %2716 = vmatprep.subr.bf16.mxu0 %v2873_v48  ;;  %1884 = vperm.xlu1 %2780, %v1881_v56   ;;  %v1826_v14 = vpop.permute.xlu0 %1825 }
 0x2c6   : > { %v1428_v24 = vpop.f32.mrb[12].mxu0  ;;  %v1477_v26 = vpop.f32.mrb[8].mxu1 }
 0x2c7   : > { %v1680_v29 = vpack.c.bf16 %v1477_v26, %v1428_v24  ;;  %v2682_v30 = vpop.f32.mrb[13].mxu0  ;;  %v2688_v31 = vpop.f32.mrb[9].mxu1 }
 0x2c8   : > { %v1431_v32 = vpop.f32.mrb[14].mxu0  ;;  %v1480_v33 = vpop.f32.mrb[10].mxu1 }
 0x2c9   : > { %v2683_v38 = vpop.f32.mrb[15].mxu0  ;;  %v2689_v39 = vpop.f32.mrb[11].mxu1  ;;  %2717 = vmatpush3.bf16.msra.mxu0 %v1680_v29 }
 0x2ca   : > { %2718 = vmatprep.subr.bf16.mxu0 %v2873_v48  ;;  %v1834_v15 = vpop.permute.xlu0 %1833 }
 0x2ce   : > { %v1526_v44 = vpop.f32.mrb[16].mxu0  ;;  %v1575_v45 = vpop.f32.mrb[12].mxu1 }
 0x2cf   : > { %v1681_v46 = vpack.c.bf16 %v1526_v44, %v3376_v40  ;;  %v2694_v47 = vpop.f32.mrb[17].mxu0  ;;  %v2700_v49 = vpop.f32.mrb[13].mxu1 }
 0x2d0   : > { %v1529_v50 = vpop.f32.mrb[18].mxu0  ;;  %v1578_v52 = vpop.f32.mrb[14].mxu1 }
 0x2d1   : > { %v2695_v36 = vpop.f32.mrb[19].mxu0  ;;  %v2701_v43 = vpop.f32.mrb[15].mxu1  ;;  %2719 = vmatpush3.bf16.msra.mxu0 %v1681_v46 }
 0x2d2   : > { %2720 = vmatprep.subr.bf16.mxu0 %v2873_v48  ;;  %v1842_v21 = vpop.permute.xlu0 %1841 }
 0x2d6   : > { %v1624_v59 = vpop.f32.mrb[20].mxu0  ;;  %v1673_v0 = vpop.f32.mrb[16].mxu1 }
 0x2d7   : > { %v1682_v1 = vpack.c.bf16 %v1624_v59, %v1575_v45  ;;  %v2706_v2 = vpop.f32.mrb[21].mxu0  ;;  %v2712_v5 = vpop.f32.mrb[17].mxu1  ;;  %v1683_v6 = vpack.c.bf16 %v1673_v0, %v1673_v0 }
 0x2d8   : > { %v1627_v7 = vpop.f32.mrb[22].mxu0  ;;  %v1676_v11 = vpop.f32.mrb[18].mxu1 }
 0x2d9   : > { %v2707_v40 = vpop.f32.mrb[23].mxu0  ;;  %v2713_v12 = vpop.f32.mrb[19].mxu1  ;;  %2721 = vmatpush3.bf16.msra.mxu0 %v1682_v1  ;;  %v1695_v13 = vsel %vm1064_vm10, %v1683_v6, 0 }
 0x2da   : > { %2722 = vmatprep.subr.bf16.mxu0 %v2873_v48  ;;  %v1824_v48 = vpop.permute.xlu1 %1823  ;;  %v1850_v23 = vpop.permute.xlu0 %1849 }
 0x2db   : > { %v1827_v29 = vsel %vm916_vm4, %v1824_v48, %v1826_v14  ;;  %v1828_v46 = vsel %vm916_vm4, %v1826_v14, %v1824_v48 }
 0x2dc   : > { %v1830_v47 = vmul.f32 %v1827_v29, %v3260_v18  ;;  %v1829_v0 = vmul.f32 %v1828_v46, %v3257_v16 }
 0x2dd   : > { %2723 = vmatpush3.bf16.msra.mxu0 %v1695_v13 }
 0x2de   : > { %v1832_v17 = vpop.permute.xlu1 %1831  ;;  %v1858_v33 = vpop.permute.xlu0 %1857 }
 0x2df   : > { %v1835_v26 = vsel %vm938_vm5, %v1832_v17, %v1834_v15  ;;  %v1836_v31 = vsel %vm938_vm5, %v1834_v15, %v1832_v17 }
 0x2e0   : > { %2725 = vmatmul.mubr.msk.bf16.vlgmr.msra.gmra.mrb[24].mxu0 %vm1060_vm11, %v1684_v54  ;;  %v1838_v32 = vmul.f32 %v1835_v26, %v3267_v20  ;;  %v1837_v36 = vmul.f32 %v1836_v31, %v3264_v19  ;;  %v1806_v26 = vld [vmem:[%s3901_s20] sm:$0xf] }
 0x2e1   : > { %2061 = vmatprep.mubr.bf16.mxu0 %v2864_v9 }
 0x2e2   : > { %v1840_v22 = vpop.permute.xlu1 %1839  ;;  %v1874_v59 = vpack.c.bf16 %v1838_v32, %v1830_v47  ;;  %v1866_v2 = vpop.permute.xlu0 %1865  ;;  %v1873_v5 = vpack.c.bf16 %v1837_v36, %v1829_v0 }
 0x2e3   : > { %v1844_v44 = vsel %vm960_vm6, %v1842_v21, %v1840_v22  ;;  %v1843_v43 = vsel %vm960_vm6, %v1840_v22, %v1842_v21 }
 0x2e4   : > { %v1845_v6 = vmul.f32 %v1843_v43, %v3282_v27 }
 0x2e6   : > { %v1848_v24 = vpop.permute.xlu1 %1847  ;;  %v1875_v54 = vpack.c.bf16 %v1845_v6, %v3125_v41 }
 0x2e7   : > { %v1852_v7 = vsel %vm982_vm7, %v1850_v23, %v1848_v24  ;;  %v1851_v35 = vsel %vm982_vm7, %v1848_v24, %v1850_v23 }
 0x2e8   : > { %v1853_v17 = vmul.f32 %v1851_v35, %v3307_v51 }
 0x2ea   : > { %v1856_v49 = vpop.permute.xlu1 %1855 }
 0x2eb   : > { %v1860_v1 = vsel %vm1004_vm8, %v1858_v33, %v1856_v49  ;;  %v1859_v40 = vsel %vm1004_vm8, %v1856_v49, %v1858_v33 }
 0x2ec   : > { %v1862_v12 = vmul.f32 %v1860_v1, %v3317_v58  ;;  %v1861_v56 = vmul.f32 %v1859_v40, %v3314_v57 }
 0x2ee   : > { %v1864_v11 = vpop.permute.xlu1 %1863  ;;  %v1877_v21 = vpack.c.bf16 %v1861_v56, %v1853_v17 }
 0x2ef   : > { %v1867_v34 = vsel %vm1026_vm9, %v1864_v11, %v1866_v2 }
 0x2f0   : > { %v1869_v14 = vmul.f32 %v1867_v34, %v3332_v3 }
 0x2f2   : > { %v1879_v22 = vpack.c.bf16 %v1869_v14, %v1869_v14 }
 0x2f4   : > { %v1891_v24 = vsel %vm1064_vm10, %v1879_v22, 0 }
 0x341   : > { %v1885_v43 = vpop.permute.xlu1 %1884 }
 0x3b3   : > { %v1731_v30 = vpop.f32.mrb[24].mxu0 }
 0x3b4   : > { %v1732_v38 = vadd.f32 %v1731_v30, %v3358_v25  ;;  %v2726_v39 = vpop.f32.mrb[25].mxu0  ;;  %v1846_v25 = vmul.f32 %v1844_v44, %v3285_v28 }
 0x3b5   : > { %v1734_v45 = vpop.f32.mrb[26].mxu0 }
 0x3b6   : > { %v1737_v50 = vpack.c.bf16 %v1732_v38, %v1732_v38  ;;  %v2727_v52 = vpop.f32.mrb[27].mxu0  ;;  %v1876_v13 = vpack.c.bf16 %v1846_v25, %v3131_v42 }
 0x3b8   : > { %2603 = vmatmul.mubr.msk.bf16.vlgmr.msra.gmra.mrb[20].mxu1 %vm815_vm0, %v1737_v50 }
 0x3b9   : > { %1897 = vmatpush1.bf16.msra.mxu1 %v1871_v37  ;;  %1928 = vmatprep.mubr.bf16.mxu1 %v2864_v9  ;;  %v1868_v9 = vsel %vm1026_vm9, %v1866_v2, %v1864_v11  ;;  %v1854_v37 = vmul.f32 %v1852_v7, %v3310_v55 }
 0x3ba   : > { %1898 = vmatprep.subr.bf16.mxu1 %v1874_v59  ;;  %v1870_v48 = vmul.f32 %v1868_v9, %v3335_v4 }
 0x3bb   : > { %v1878_v15 = vpack.c.bf16 %v1862_v12, %v1854_v37 }
 0x3bc   : > { %v1880_v23 = vpack.c.bf16 %v1870_v48, %v1870_v48 }
 0x3bd   : > { %1899 = vmatpush1.bf16.msra.mxu1 %v1873_v5  ;;  %v1054_v5 = vld [vmem:[%s3903_s30] sm:$0xff] }
 0x3be   : > { %1900 = vmatprep.subr.bf16.mxu1 %v1876_v13 }
 0x3c1   : > { %1901 = vmatpush1.bf16.msra.mxu1 %v1875_v54 }
 0x3c2   : > { %1902 = vmatprep.subr.bf16.mxu1 %v1878_v15 }
 0x3c5   : > { %1903 = vmatpush1.bf16.msra.mxu1 %v1877_v21 }
 0x3c6   : > { %2606 = vmatprep.subr.msk.bf16.mxu1 %vm1064_vm10, %v1880_v23 }
 0x3c9   : > { %1905 = vmatpush1.bf16.msra.mxu1 %v1891_v24 }
 0x3cc   : > { %2607 = vmatmul.mubr.msk.bf16.vlgmr.msra.gmra.mrb[24].mxu1 %vm1060_vm11, %v1806_v26 }
 0x48b   : > { %v1787_v29 = vpop.f32.mrb[20].mxu1 }
 0x48c   : > { %v1788_v30 = vadd.f32 %v1787_v29, %v3125_v41  ;;  %v1789_v31 = vpop.f32.mrb[21].mxu1 }
 0x48d   : > { %v1790_v32 = vadd.f32 %v1789_v31, %v3131_v42  ;;  %v1791_v33 = vpop.f32.mrb[22].mxu1 }
 0x48e   : > { %v2604_v38 = vmul.f32 -1.442695, %v1788_v30  ;;  %v1792_v39 = vpop.f32.mrb[23].mxu1 }
 0x48f   : > { %v2605_v44 = vmul.f32 -1.442695, %v1790_v32 }
 0x490   : > { %2812 = vpow2.f32 %v2604_v38 }
 0x491   : > { %2814 = vpow2.f32 %v2605_v44 }
 0x49a   : > { %v2813_v45 = vpop.eup %2812 }
 0x49b   : > { %v2815_v46 = vpop.eup %2814  ;;  %v1800_v47 = vadd.f32 1.0, %v2813_v45 }
 0x49c   : > { %v1801_v49 = vadd.f32 1.0, %v2815_v46 }
 0x49d   : > { %2816 = vrcp.f32 %v1800_v47 }
 0x49e   : > { %2818 = vrcp.f32 %v1801_v49 }
 0x49f   : > { %v1930_v50 = vpop.f32.mrb[24].mxu1 }
 0x4a0   : > { %v1932_v52 = vpop.f32.mrb[25].mxu1  ;;  %v1931_v25 = vadd.f32 %v1930_v50, %v1885_v43 }
 0x4a1   : > { %v1934_v36 = vpop.f32.mrb[26].mxu1  ;;  %v1933_v59 = vadd.f32 %v1932_v52, %v1885_v43 }
 0x4a2   : > { %v1935_v41 = vpop.f32.mrb[27].mxu1 }
 0x4a7   : > { %v2817_v42 = vpop.eup %2816 }
 0x4a8   : > { %v2819_v0 = vpop.eup %2818  ;;  %v3514_v1 = vmul.f32 %v2817_v42, %v1931_v25 }
 0x4a9   : > { %v3516_v2 = vmul.f32 %v2819_v0, %v1933_v59 }
 0x4aa   : > { %1940 = vrot.lane.b32.xlu0 %v3514_v1, %s2866_s3 }
 0x4ab   : > { %1942 = vrot.lane.b32.xlu1 %v3516_v2, %s2866_s3 }
 0x4ae   : > { %1948 = vrot.lane.b32.xlu0 %v3514_v1, %s2865_s1 }
 0x4af   : > { %1950 = vrot.lane.b32.xlu1 %v3516_v2, %s2865_s1 }
 0x4b2   : > { %1956 = vrot.lane.b32.xlu0 %v3514_v1, %s2867_s17 }
 0x4b3   : > { %1958 = vrot.lane.b32.xlu1 %v3516_v2, %s2867_s17 }
 0x4b6   : > { %1964 = vrot.lane.b32.xlu0 %v3514_v1, %s2868_s26 }
 0x4b7   : > { %1966 = vrot.lane.b32.xlu1 %v3516_v2, %s2868_s26 }
 0x4ba   : > { %1972 = vrot.lane.b32.xlu0 %v3514_v1, %s2869_s18 }
 0x4bb   : > { %1974 = vrot.lane.b32.xlu1 %v3516_v2, %s2869_s18 }
 0x4be   : > { %1980 = vrot.lane.b32.xlu0 %v3514_v1, %s3866_s27 }
 0x4bf   : > { %1982 = vrot.lane.b32.xlu1 %v3516_v2, %s3866_s27  ;;  %s3904_s27 = scalar_lea.vmem %s3847_s10, %s3002_s22 }
 0x4c0   : > { %v2014_v6 = vld [vmem:[%s3904_s27] sm:$0xff] }
 0x4c2   : > { %1988 = vrot.lane.b32.xlu0 %v3514_v1, %s2871_s21 }
 0x4c3   : > { %1990 = vrot.lane.b32.xlu1 %v3516_v2, %s2871_s21 }
 0x4c6   : > { %1996 = vrot.lane.b32.xlu0 %v3514_v1, %s3902_s14 }
 0x4c7   : > { %1998 = vrot.lane.b32.xlu1 %v3516_v2, %s3902_s14 }
 0x4ca   : > { %1057 = vperm.xlu0 %2779, %v1054_v5  }
 0x4cb   : > { %2017 = vperm.xlu1 %2780, %v2014_v6  }
 0x51c   : > { %v1941_v7 = vpop.permute.xlu0 %1940 }
 0x51d   : > { %v1943_v11 = vpop.permute.xlu1 %1942 }
 0x51e   : > { %v1944_v40 = vsel %vm873_vm2, %v1941_v7, %v1943_v11  ;;  %v1945_v12 = vsel %vm873_vm2, %v1943_v11, %v1941_v7 }
 0x51f   : > { %v1946_v37 = vmul.f32 %v1945_v12, %v3225_v60  ;;  %v1947_v54 = vmul.f32 %v1944_v40, %v3232_v62 }
 0x520   : > { %v1949_v13 = vpop.permute.xlu0 %1948 }
 0x521   : > { %v1951_v34 = vpop.permute.xlu1 %1950 }
 0x522   : > { %v1952_v9 = vsel %vm894_vm3, %v1949_v13, %v1951_v34  ;;  %v1953_v35 = vsel %vm894_vm3, %v1951_v34, %v1949_v13 }
 0x523   : > { %v1954_v56 = vmul.f32 %v1953_v35, %v3229_v61  ;;  %v1955_v14 = vmul.f32 %v1952_v9, %v3235_v63 }
 0x524   : > { %v1957_v48 = vpop.permute.xlu0 %1956 }
 0x525   : > { %v2004_v15 = vpack.c.bf16 %v1954_v56, %v1946_v37  ;;  %v1959_v17 = vpop.permute.xlu1 %1958  ;;  %v2005_v21 = vpack.c.bf16 %v1955_v14, %v1947_v54 }
 0x526   : > { %v1960_v22 = vsel %vm916_vm4, %v1957_v48, %v1959_v17  ;;  %v1961_v23 = vsel %vm916_vm4, %v1959_v17, %v1957_v48  ;;  %v1939_v17 = vld [vmem:[%s3905_s24] sm:$0xf] }
 0x527   : > { %2029 = vmatprep.subr.bf16.mxu0 %v2005_v21  ;;  %v1962_v31 = vmul.f32 %v1961_v23, %v3257_v16  ;;  %v1963_v32 = vmul.f32 %v1960_v22, %v3260_v18 }
 0x528   : > { %2030 = vmatpush1.bf16.msra.mxu0 %v2004_v15  ;;  %v1965_v24 = vpop.permute.xlu0 %1964 }
 0x529   : > { %v1967_v26 = vpop.permute.xlu1 %1966 }
 0x52a   : > { %v1968_v29 = vsel %vm938_vm5, %v1965_v24, %v1967_v26  ;;  %v1969_v30 = vsel %vm938_vm5, %v1967_v26, %v1965_v24 }
 0x52b   : > { %v1970_v33 = vmul.f32 %v1969_v30, %v3264_v19  ;;  %v1971_v38 = vmul.f32 %v1968_v29, %v3267_v20 }
 0x52c   : > { %v1973_v39 = vpop.permute.xlu0 %1972 }
 0x52d   : > { %v2006_v44 = vpack.c.bf16 %v1970_v33, %v1962_v31  ;;  %v1975_v45 = vpop.permute.xlu1 %1974  ;;  %v2007_v46 = vpack.c.bf16 %v1971_v38, %v1963_v32 }
 0x52e   : > { %v1976_v47 = vsel %vm960_vm6, %v1973_v39, %v1975_v45  ;;  %v1977_v49 = vsel %vm960_vm6, %v1975_v45, %v1973_v39  ;;  %v2809_v45 = vld [vmem:[%s3050_s2 + $0x4] ss:$8 sps:$4 sm:$0xff]  }
 0x52f   : > { %v1978_v50 = vmul.f32 %v1976_v47, %v3282_v27  ;;  %v1979_v52 = vmul.f32 %v1977_v49, %v3285_v28  ;;  %2031 = vmatprep.subr.bf16.mxu0 %v2007_v46  ;;  %2612 = vmatprep.mubr.msk.bf16.mxu1 %vm815_vm0, %v2809_v45  ;;  %v2221_v46 = vld [vmem:[%s3055_s25 + $0x8] sm:$0xff] }
 0x530   : > { %2032 = vmatpush1.bf16.msra.mxu0 %v2006_v44  ;;  %v1981_v36 = vpop.permute.xlu0 %1980 }
 0x531   : > { %v2008_v43 = vpack.c.bf16 %v1978_v50, %v3514_v1  ;;  %v1983_v41 = vpop.permute.xlu1 %1982  ;;  %v2009_v25 = vpack.c.bf16 %v1979_v52, %v3516_v2 }
 0x532   : > { %v1984_v59 = vsel %vm982_vm7, %v1981_v36, %v1983_v41  ;;  %v1985_v42 = vsel %vm982_vm7, %v1983_v41, %v1981_v36 }
 0x533   : > { %2033 = vmatprep.subr.bf16.mxu0 %v2009_v25  ;;  %v1986_v1 = vmul.f32 %v1984_v59, %v3307_v51  ;;  %v1987_v2 = vmul.f32 %v1985_v42, %v3310_v55 }
 0x534   : > { %2034 = vmatpush1.bf16.msra.mxu0 %v2008_v43  ;;  %v1989_v0 = vpop.permute.xlu0 %1988 }
 0x535   : > { %v1991_v5 = vpop.permute.xlu1 %1990 }
 0x536   : > { %v1992_v6 = vsel %vm1004_vm8, %v1989_v0, %v1991_v5  ;;  %v1993_v7 = vsel %vm1004_vm8, %v1991_v5, %v1989_v0 }
 0x537   : > { %v1994_v11 = vmul.f32 %v1992_v6, %v3314_v57  ;;  %v1995_v40 = vmul.f32 %v1993_v7, %v3317_v58 }
 0x538   : > { %v1997_v12 = vpop.permute.xlu0 %1996 }
 0x539   : > { %v2010_v13 = vpack.c.bf16 %v1994_v11, %v1986_v1  ;;  %v1999_v34 = vpop.permute.xlu1 %1998  ;;  %v2011_v9 = vpack.c.bf16 %v1995_v40, %v1987_v2 }
 0x53a   : > { %v2000_v35 = vsel %vm1026_vm9, %v1997_v12, %v1999_v34  ;;  %v2001_v37 = vsel %vm1026_vm9, %v1999_v34, %v1997_v12 }
 0x53b   : > { %v2002_v54 = vmul.f32 %v2000_v35, %v3332_v3  ;;  %v2003_v56 = vmul.f32 %v2001_v37, %v3335_v4  ;;  %2035 = vmatprep.subr.bf16.mxu0 %v2011_v9 }
 0x53c   : > { %2036 = vmatpush1.bf16.msra.mxu0 %v2010_v13 }
 0x53d   : > { %v2012_v14 = vpack.c.bf16 %v2002_v54, %v2002_v54  ;;  %v2013_v48 = vpack.c.bf16 %v2003_v56, %v2003_v56 }
 0x53f   : > { %2608 = vmatprep.subr.msk.bf16.mxu0 %vm1064_vm10, %v2013_v48  ;;  %v2024_v15 = vsel %vm1064_vm10, %v2012_v14, 0 }
 0x540   : > { %2038 = vmatpush1.bf16.msra.mxu0 %v2024_v15 }
 0x543   : > { %2609 = vmatmul.mubr.msk.bf16.vlgmr.msra.gmra.mrb[28].mxu0 %vm1060_vm11, %v1939_v17 }
 0x549   : > { %v1058_v21 = vpop.permute.xlu0 %1057 }
 0x54a   : > { %v1106_v22 = vadd.f32 %v3438_v8, %v1058_v21  ;;  %v1108_v23 = vadd.f32 %v3440_v10, %v1058_v21  ;;  %v2220_v8 = vld [vmem:[%s3055_s25] sm:$0xff]  ;;  %v2018_v10 = vpop.permute.xlu1 %2017 }
 0x54c   : > { %v3620_v24 = vmax.f32 %v1106_v22, 0.0  ;;  %v3624_v26 = vmax.f32 %v1108_v23, 0.0 }
 0x54e   : > { %2074 = vrot.lane.b32.xlu0 %v3620_v24, %s2866_s3 }
 0x552   : > { %2078 = vrot.lane.b32.xlu0 %v3624_v26, %s2866_s3 }
 0x556   : > { %2090 = vrot.lane.b32.xlu0 %v3620_v24, %s2865_s1 }
 0x55a   : > { %2094 = vrot.lane.b32.xlu0 %v3624_v26, %s2865_s1 }
 0x55e   : > { %2106 = vrot.lane.b32.xlu0 %v3620_v24, %s2867_s17 }
 0x562   : > { %2110 = vrot.lane.b32.xlu0 %v3624_v26, %s2867_s17 }
 0x566   : > { %2122 = vrot.lane.b32.xlu0 %v3620_v24, %s2868_s26 }
 0x56a   : > { %2126 = vrot.lane.b32.xlu0 %v3624_v26, %s2868_s26 }
 0x56e   : > { %2138 = vrot.lane.b32.xlu0 %v3620_v24, %s2869_s18 }
 0x572   : > { %2142 = vrot.lane.b32.xlu0 %v3624_v26, %s2869_s18 }
 0x576   : > { %2154 = vrot.lane.b32.xlu0 %v3620_v24, %s3906_s16 }
 0x57a   : > { %2158 = vrot.lane.b32.xlu0 %v3624_v26, %s3906_s16 }
 0x57e   : > { %2170 = vrot.lane.b32.xlu0 %v3620_v24, %s2871_s21 }
 0x582   : > { %2174 = vrot.lane.b32.xlu0 %v3624_v26, %s2871_s21 }
 0x586   : > { %2186 = vrot.lane.b32.xlu0 %v3620_v24, %s3902_s14 }
 0x58a   : > { %2190 = vrot.lane.b32.xlu0 %v3624_v26, %s3902_s14 }
 0x58e   : > { %2224 = vperm.xlu0 %2779, %v2220_v8  }
 0x5c0   : > { %v2075_v47 = vpop.permute.xlu0 %2074 }
 0x5c4   : > { %v2079_v49 = vpop.permute.xlu0 %2078 }
 0x5c5   : > { %v2082_v12 = vsel %vm873_vm2, %v2075_v47, %v2079_v49  ;;  %v2084_v13 = vsel %vm873_vm2, %v2079_v49, %v2075_v47 }
 0x5c6   : > { %v2086_v37 = vmul.f32 %v2084_v13, %v3225_v60  ;;  %v2087_v54 = vmul.f32 %v2082_v12, %v3232_v62 }
 0x5c8   : > { %v2091_v50 = vpop.permute.xlu0 %2090 }
 0x5cc   : > { %v2095_v52 = vpop.permute.xlu0 %2094 }
 0x5cd   : > { %v2098_v48 = vsel %vm894_vm3, %v2091_v50, %v2095_v52  ;;  %v2100_v15 = vsel %vm894_vm3, %v2095_v52, %v2091_v50 }
 0x5d0   : > { %v2107_v36 = vpop.permute.xlu0 %2106 }
 0x5d4   : > { %v2111_v43 = vpop.permute.xlu0 %2110 }
 0x5d8   : > { %v2123_v25 = vpop.permute.xlu0 %2122 }
 0x5dc   : > { %v2127_v42 = vpop.permute.xlu0 %2126 }
 0x5e0   : > { %v3696_v6 = vpop.permute.xlu0 %2138 }
 0x5e4   : > { %v2143_v1 = vpop.permute.xlu0 %2142 }
 0x5e8   : > { %v3704_v40 = vpop.permute.xlu0 %2154 }
 0x5ec   : > { %v2159_v17 = vpop.permute.xlu0 %2158 }
 0x5f0   : > { %v2171_v49 = vpop.permute.xlu0 %2170 }
 0x616   : > { %v2063_v29 = vpop.f32.mrb[28].mxu0 }
 0x617   : > { %v2064_v30 = vadd.f32 %v2063_v29, %v2018_v10  ;;  %v2065_v31 = vpop.f32.mrb[29].mxu0 }
 0x618   : > { %v2067_v32 = vpop.f32.mrb[30].mxu0  ;;  %v2066_v39 = vadd.f32 %v2065_v31, %v2018_v10  ;;  %v2114_v31 = vsel %vm916_vm4, %v2107_v36, %v2111_v43 }
 0x619   : > { %v3657_v33 = vmax.f32 %v2064_v30, 0.0  ;;  %v2068_v38 = vpop.f32.mrb[31].mxu0  ;;  %v2116_v32 = vsel %vm916_vm4, %v2111_v43, %v2107_v36  ;;  %v2130_v36 = vsel %vm938_vm5, %v2123_v25, %v2127_v42  ;;  %v2132_v43 = vsel %vm938_vm5, %v2127_v42, %v2123_v25  ;;  %v2175_v25 = vpop.permute.xlu0 %2174 }
 0x61a   : > { %v3673_v44 = vmax.f32 %v2066_v39, 0.0 }
 0x61b   : > { %2076 = vrot.lane.b32.xlu1 %v3657_v33, %s2866_s3 }
 0x61f   : > { %2092 = vrot.lane.b32.xlu1 %v3657_v33, %s2865_s1 }
 0x623   : > { %2108 = vrot.lane.b32.xlu1 %v3657_v33, %s2867_s17 }
 0x627   : > { %2124 = vrot.lane.b32.xlu1 %v3657_v33, %s2868_s26 }
 0x62b   : > { %2140 = vrot.lane.b32.xlu1 %v3657_v33, %s2869_s18 }
 0x62f   : > { %2156 = vrot.lane.b32.xlu1 %v3657_v33, %s3906_s16 }
 0x633   : > { %2172 = vrot.lane.b32.xlu1 %v3657_v33, %s2871_s21 }
 0x637   : > { %2080 = vrot.lane.b32.xlu1 %v3673_v44, %s2866_s3 }
 0x63b   : > { %2096 = vrot.lane.b32.xlu1 %v3673_v44, %s2865_s1 }
 0x63f   : > { %2112 = vrot.lane.b32.xlu1 %v3673_v44, %s2867_s17 }
 0x643   : > { %2128 = vrot.lane.b32.xlu1 %v3673_v44, %s2868_s26 }
 0x647   : > { %2188 = vrot.lane.b32.xlu1 %v3657_v33, %s3902_s14 }
 0x64b   : > { %2144 = vrot.lane.b32.xlu1 %v3673_v44, %s2869_s18 }
 0x64f   : > { %2160 = vrot.lane.b32.xlu1 %v3673_v44, %s3906_s16 }
 0x653   : > { %2176 = vrot.lane.b32.xlu1 %v3673_v44, %s2871_s21 }
 0x657   : > { %2192 = vrot.lane.b32.xlu1 %v3673_v44, %s3902_s14 }
 0x65b   : > { %2229 = vperm.xlu1 %2780, %v2221_v46  }
 0x68d   : > { %v2077_v41 = vpop.permute.xlu1 %2076 }
 0x691   : > { %v2093_v59 = vpop.permute.xlu1 %2092 }
 0x695   : > { %v2109_v0 = vpop.permute.xlu1 %2108 }
 0x699   : > { %v2125_v5 = vpop.permute.xlu1 %2124 }
 0x69d   : > { %v3698_v7 = vpop.permute.xlu1 %2140 }
 0x6a1   : > { %v3700_v2 = vpop.permute.xlu1 %2156 }
 0x6a5   : > { %v3702_v11 = vpop.permute.xlu1 %2172 }
 0x6a9   : > { %v2081_v34 = vpop.permute.xlu1 %2080 }
 0x6aa   : > { %v2083_v9 = vsel %vm873_vm2, %v2077_v41, %v2081_v34  ;;  %v2085_v35 = vsel %vm873_vm2, %v2081_v34, %v2077_v41 }
 0x6ab   : > { %v2088_v56 = vmul.f32 %v2085_v35, %v3225_v60  ;;  %v2089_v14 = vmul.f32 %v2083_v9, %v3232_v62  ;;  %v2102_v60 = vmul.f32 %v2100_v15, %v3229_v61  ;;  %v2103_v62 = vmul.f32 %v2098_v48, %v3235_v63  ;;  %v2187_v15 = vpop.permute.xlu0 %2186 }
 0x6ad   : > { %v2202_v21 = vpack.c.bf16 %v2088_v56, %v2086_v37  ;;  %v2097_v22 = vpop.permute.xlu1 %2096  ;;  %v2203_v23 = vpack.c.bf16 %v2089_v14, %v2087_v54  ;;  %v2211_v54 = vpack.c.bf16 %v3673_v44, %v3624_v26  ;;  %v2210_v26 = vpack.c.bf16 %v3657_v33, %v3620_v24 }
 0x6ae   : > { %v2099_v8 = vsel %vm894_vm3, %v2093_v59, %v2097_v22  ;;  %v2101_v10 = vsel %vm894_vm3, %v2097_v22, %v2093_v59 }
 0x6af   : > { %v2104_v29 = vmul.f32 %v2101_v10, %v3229_v61  ;;  %v2105_v30 = vmul.f32 %v2099_v8, %v3235_v63  ;;  %2244 = vmatprep.subr.bf16.mxu1 %v2203_v23  ;;  %v2118_v61 = vmul.f32 %v2116_v32, %v3257_v16  ;;  %v2119_v63 = vmul.f32 %v2114_v31, %v3260_v18 }
 0x6b0   : > { %2245 = vmatpush1.bf16.msra.mxu1 %v2202_v21  ;;  %v2162_v21 = vsel %vm982_vm7, %v3704_v40, %v2159_v17 }
 0x6b1   : > { %v2204_v38 = vpack.c.bf16 %v2104_v29, %v2102_v60  ;;  %v2113_v39 = vpop.permute.xlu1 %2112  ;;  %v2205_v45 = vpack.c.bf16 %v2105_v30, %v2103_v62  ;;  %v2180_v60 = vsel %vm1004_vm8, %v2175_v25, %v2171_v49  ;;  %v2191_v62 = vpop.permute.xlu0 %2190 }
 0x6b2   : > { %v2115_v46 = vsel %vm916_vm4, %v2109_v0, %v2113_v39  ;;  %v2117_v47 = vsel %vm916_vm4, %v2113_v39, %v2109_v0  ;;  %v2183_v32 = vmul.f32 %v2180_v60, %v3317_v58 }
 0x6b3   : > { %v2120_v50 = vmul.f32 %v2117_v47, %v3257_v16  ;;  %v2121_v52 = vmul.f32 %v2115_v46, %v3260_v18  ;;  %2246 = vmatprep.subr.bf16.mxu1 %v2205_v45  ;;  %v2134_v16 = vmul.f32 %v2132_v43, %v3264_v19  ;;  %v2135_v18 = vmul.f32 %v2130_v36, %v3267_v20 }
 0x6b4   : > { %2247 = vmatpush1.bf16.msra.mxu1 %v2204_v38  ;;  %v2194_v45 = vsel %vm1026_vm9, %v2187_v15, %v2191_v62  ;;  %v2196_v46 = vsel %vm1026_vm9, %v2191_v62, %v2187_v15 }
 0x6b5   : > { %v2206_v41 = vpack.c.bf16 %v2120_v50, %v2118_v61  ;;  %v2129_v59 = vpop.permute.xlu1 %2128  ;;  %v2207_v0 = vpack.c.bf16 %v2121_v52, %v2119_v63 }
 0x6b6   : > { %v2131_v12 = vsel %vm938_vm5, %v2125_v5, %v2129_v59  ;;  %v2133_v13 = vsel %vm938_vm5, %v2129_v59, %v2125_v5  ;;  %v2146_v5 = vsel %vm960_vm6, %v3696_v6, %v2143_v1  ;;  %v2225_v59 = vpop.permute.xlu0 %2224 }
 0x6b7   : > { %v2136_v34 = vmul.f32 %v2133_v13, %v3264_v19  ;;  %v2137_v9 = vmul.f32 %v2131_v12, %v3267_v20  ;;  %2248 = vmatprep.subr.bf16.mxu1 %v2207_v0  ;;  %v2148_v19 = vsel %vm960_vm6, %v2143_v1, %v3696_v6  ;;  %v2150_v44 = vmul.f32 %v2146_v5, %v3282_v27 }
 0x6b8   : > { %2249 = vmatpush1.bf16.msra.mxu1 %v2206_v41  ;;  %v2151_v48 = vmul.f32 %v2148_v19, %v3285_v28  ;;  %v2811_v41 = vld [vmem:[%s3050_s2] ss:$8 sps:$4 sm:$0xff]   ;;  %s3907_s2 = sld [smem:[#allocation3_spill]] }
 0x6b9   : > { %v2208_v42 = vpack.c.bf16 %v2136_v34, %v2134_v16  ;;  %v2189_v35 = vpop.permute.xlu1 %2188  ;;  %v2209_v37 = vpack.c.bf16 %v2137_v9, %v2135_v18  ;;  %v2820_v34 = vld [vmem:[#allocation2] sm:$0xff] }
 0x6bb   : > { %2250 = vmatprep.subr.bf16.mxu1 %v2209_v37 }
 0x6bc   : > { %2251 = vmatpush1.bf16.msra.mxu1 %v2208_v42 }
 0x6bd   : > { %v2145_v20 = vpop.permute.xlu1 %2144  ;;  %2252 = vmatprep.subr.bf16.mxu1 %v2211_v54  ;;  %v2822_v54 = vld [vmem:[#allocation2 + $0x10] sm:$0xff] }
 0x6be   : > { %v2147_v56 = vsel %vm960_vm6, %v3698_v7, %v2145_v20  ;;  %v2149_v14 = vsel %vm960_vm6, %v2145_v20, %v3698_v7  ;;  %v2164_v7 = vsel %vm982_vm7, %v2159_v17, %v3704_v40  ;;  %v2178_v17 = vsel %vm1004_vm8, %v2171_v49, %v2175_v25  ;;  %v2823_v20 = vld [vmem:[#allocation2 + $0x18] sm:$0xff]  ;;  %p2613_p8 = scmp.ne.s32.totalorder %s3907_s2, 1 }
 0x6bf   : > { %v2152_v6 = vmul.f32 %v2147_v56, %v3282_v27  ;;  %v2153_v1 = vmul.f32 %v2149_v14, %v3285_v28  ;;  %v2166_v28 = vmul.f32 %v2162_v21, %v3307_v51  ;;  %v2167_v8 = vmul.f32 %v2164_v7, %v3310_v55 }
 0x6c0   : > { %2253 = vmatpush1.bf16.msra.mxu1 %v2210_v26  ;;  %v2199_v49 = vmul.f32 %v2196_v46, %v3335_v4 }
 0x6c1   : > { %v2212_v22 = vpack.c.bf16 %v2152_v6, %v2150_v44  ;;  %v2161_v24 = vpop.permute.xlu1 %2160  ;;  %v2213_v33 = vpack.c.bf16 %v2153_v1, %v2151_v48 }
 0x6c2   : > { %v2163_v23 = vsel %vm982_vm7, %v3700_v2, %v2161_v24  ;;  %v2165_v27 = vsel %vm982_vm7, %v2161_v24, %v3700_v2 }
 0x6c3   : > { %v2168_v10 = vmul.f32 %v2163_v23, %v3307_v51  ;;  %v2169_v40 = vmul.f32 %v2165_v27, %v3310_v55  ;;  %2254 = vmatprep.subr.bf16.mxu1 %v2213_v33  ;;  %v2182_v55 = vmul.f32 %v2178_v17, %v3314_v57 }
 0x6c4   : > { %2255 = vmatpush1.bf16.msra.mxu1 %v2212_v22 }
 0x6c5   : > { %v2214_v29 = vpack.c.bf16 %v2168_v10, %v2166_v28  ;;  %v2177_v30 = vpop.permute.xlu1 %2176  ;;  %v2215_v2 = vpack.c.bf16 %v2169_v40, %v2167_v8 }
 0x6c6   : > { %v2179_v31 = vsel %vm1004_vm8, %v3702_v11, %v2177_v30  ;;  %v2181_v51 = vsel %vm1004_vm8, %v2177_v30, %v3702_v11 }
 0x6c7   : > { %v2184_v38 = vmul.f32 %v2179_v31, %v3314_v57  ;;  %v2185_v39 = vmul.f32 %v2181_v51, %v3317_v58  ;;  %2256 = vmatprep.subr.bf16.mxu1 %v2215_v2  ;;  %v2198_v58 = vmul.f32 %v2194_v45, %v3332_v3 }
 0x6c8   : > { %2257 = vmatpush1.bf16.msra.mxu1 %v2214_v29 }
 0x6c9   : > { %v2216_v47 = vpack.c.bf16 %v2184_v38, %v2182_v55  ;;  %v2193_v61 = vpop.permute.xlu1 %2192  ;;  %v2217_v11 = vpack.c.bf16 %v2185_v39, %v2183_v32 }
 0x6ca   : > { %v2195_v63 = vsel %vm1026_vm9, %v2189_v35, %v2193_v61  ;;  %v2197_v57 = vsel %vm1026_vm9, %v2193_v61, %v2189_v35 }
 0x6cb   : > { %v2200_v50 = vmul.f32 %v2195_v63, %v3332_v3  ;;  %v2201_v52 = vmul.f32 %v2197_v57, %v3335_v4  ;;  %2258 = vmatprep.subr.bf16.mxu1 %v2217_v11  ;;  %v2821_v4 = vld [vmem:[#allocation2 + $0x8] sm:$0xff] }
 0x6cc   : > { %2259 = vmatpush1.bf16.msra.mxu1 %v2216_v47 }
 0x6cd   : > { %v2218_v36 = vpack.c.bf16 %v2200_v50, %v2198_v58  ;;  %v2219_v43 = vpack.c.bf16 %v2201_v52, %v2199_v49 }
 0x6cf   : > { %2260 = vmatprep.subr.bf16.mxu1 %v2219_v43 }
 0x6d0   : > { %2261 = vmatpush1.bf16.msra.mxu1 %v2218_v36 }
 0x6d3   : > { %2277 = vmatmul.mubr.bf16.vlgmr.msra.gmra.mrb[28].mxu1 %v2811_v41 }
 0x6da   : > { %v2230_v13 = vpop.permute.xlu1 %2229 }
 0x7a6   : > { %v2278_v0 = vpop.f32.mrb[28].mxu1 }
 0x7a7   : > { %v2279_v53 = vadd.f32 %v2278_v0, %v2225_v59  ;;  %v2280_v12 = vpop.f32.mrb[29].mxu1 }
 0x7a8   : > { %v2281_v16 = vadd.f32 %v2280_v12, %v2225_v59  ;;  %v2282_v18 = vpop.f32.mrb[30].mxu1 }
 0x7a9   : > { %v2287_v9 = vadd.f32 %v2820_v34, %v2279_v53  ;;  %v2283_v3 = vadd.f32 %v2282_v18, %v2230_v13  ;;  %v2284_v25 = vpop.f32.mrb[31].mxu1 }
 0x7aa   : > { %v2288_v42 = vadd.f32 %v2821_v4, %v2281_v16  ;;  %v2285_v35 = vadd.f32 %v2284_v25, %v2230_v13  ;;  %2302 = sbr.rel (%p2613_p8) target bundleno = 1969 (0x7b1), region = 96 }
 0x7ab   : > { %v2291_v37 = vmax.f32 %v2287_v9, 0.0  ;;  %v2289_v5 = vadd.f32 %v2822_v54, %v2283_v3 }
 0x7ac   : > { %v2292_v19 = vmax.f32 %v2288_v42, 0.0  ;;  %v2290_v56 = vadd.f32 %v2823_v20, %v2285_v35 }
 0x7ad   : > { %2295 = vst [vmem:[#allocation2] sm:$0xff] %v2291_v37  ;;  %v2293_v14 = vmax.f32 %v2289_v5, 0.0  ;;  %2303 = vst [vmem:[%s3060_s29] sm:$0xff] (!%p2613_p8), %v2291_v37 }
 0x7ae   : > { %2296 = vst [vmem:[#allocation2 + $0x8] sm:$0xff] %v2292_v19  ;;  %v2294_v26 = vmax.f32 %v2290_v56, 0.0  ;;  %2304 = vst [vmem:[%s3060_s29 + $0x8] sm:$0xff] (!%p2613_p8), %v2292_v19 }
 0x7af   : > { %2297 = vst [vmem:[#allocation2 + $0x10] sm:$0xff] %v2293_v14  ;;  %2305 = vst [vmem:[%s3060_s29 + $0x10] sm:$0xff] (!%p2613_p8), %v2293_v14 }
 0x7b0   : > { %2298 = vst [vmem:[#allocation2 + $0x18] sm:$0xff] %v2294_v26  ;;  %2306 = vst [vmem:[%s3060_s29 + $0x18] sm:$0xff] (!%p2613_p8), %v2294_v26 }
 0x7b1 PF: > { %s3908_s25 = sld [smem:[#allocation6_spill]]  ;;  %s3909_s24 = sld [smem:[#allocation4_spill]] }
 0x7b2   : > { %s3911_s26 = sld [smem:[#allocation7_spill]]  ;;  %s3912_s27 = sld [smem:[#allocation8_spill]] }
 0x7b7   : > { %s27_s28 = sadd.s32 1, %s3908_s25   ;;  %s3910_s25 = sld [smem:[#allocation5_spill]] }
 0x7b8   : > { %p24_p9 = scmp.ge.s32.totalorder %s27_s28, 6  }
 0x7ba   :  { %26 = sbr.rel (!%p24_p9) target bundleno = 10 (0xa), region = 176 }

</bundles_post_ra>
